<compile_context>
chip_gen: v7x
topology: tpu7x:2x2x1
jax: 0.10.0
libtpu: 0.0.40
codegen_flags: <defaults>
</compile_context>

<pallas_src>
import jax
import jax.numpy as jnp
from jax import lax
from jax.experimental import pallas as pl
from jax.experimental.pallas import tpu as pltpu

EPS = 1e-5  # BatchNorm2d default eps


# --------------------------------------------------------------------------
# Fused kernel builder (closure over static shapes / stride)
# --------------------------------------------------------------------------
def _build_fused_kernel(N, C, H, W, O, stride):
    Ho = (H - 1) // stride + 1
    Wo = (W - 1) // stride + 1
    HW = H * W
    HWo = Ho * Wo
    # halo for shifts in [-(W+1), W+1]; lane-aligned (multiple of 128) so the big
    # scratch store is an unmasked, aligned vst.
    PAD = ((W + 1 + 127) // 128) * 128

    small_pointwise = C <= 16  # toy channel counts: VPU broadcast-MACs beat the MXU

    def _body(x_ref, wdw_ref, mask_ref, p1_ref, wpw_ref, p2_ref, o_ref, pad_ref,
              sel_ref=None):
        f32 = jnp.float32

        # ---- depthwise 3x3: zero-filled halo in VMEM + 9 masked shifted VPU MACs ----
        pad_ref[...] = jnp.zeros((N, C, HW + 2 * PAD), f32)
        pad_ref[:, :, PAD:PAD + HW] = x_ref[...]                   # lane-aligned store

        acc = jnp.zeros((N, C, HW), f32)
        for k in range(9):
            dy, dx = k // 3, k % 3
            s = (dy - 1) * W + (dx - 1)
            xs = pad_ref[:, :, PAD + s:PAD + s + HW]               # x[p + s], 0 outside
            coef = mask_ref[k][None] * wdw_ref[k][None]            # (1,1,HW)*(1,C,1)
            acc = acc + xs * coef

        # ---- stride: pick strided output positions while still in VMEM ----
        if sel_ref is not None:
            sel = sel_ref[...]                                     # (HW, HWo) 0/1
            acc = jnp.stack(
                [jnp.dot(acc[n], sel, preferred_element_type=f32) for n in range(N)],
                axis=0)                                            # (N, C, HWo)
        y1 = acc + p1_ref[0][None]                                 # + conv1 bias

        # ---- BN1 (training-mode batch stats, computed in VMEM) + ReLU ----
        inv1 = 1.0 / float(N * HWo)
        m1 = jnp.sum(jnp.sum(y1, axis=2, keepdims=True), axis=0, keepdims=True) * inv1
        d1 = y1 - m1
        v1 = jnp.sum(jnp.sum(d1 * d1, axis=2, keepdims=True), axis=0, keepdims=True) * inv1
        a = jnp.maximum(
            d1 * (p1_ref[1][None] * lax.rsqrt(v1 + EPS)) + p1_ref[2][None], 0.0)

        # ---- pointwise 1x1 conv ----
        wpw = wpw_ref[...]                                         # (O, C)
        b2 = p2_ref[0]                                             # (O, 1)

        def pointwise(a_n):                                        # (C, HWo) -> (O, HWo)
            if small_pointwise:
                out = jnp.zeros((O, HWo), f32)
                for c in range(C):
                    out = out + wpw[:, c:c + 1] * a_n[c:c + 1, :]  # VPU outer-product MAC
                return out + b2
            # real channel counts: single MXU matmul over channels
            # TODO(synk): cast wpw / a_n to bfloat16 on v6e/v7x for ~3x MXU throughput.
            return jnp.dot(wpw, a_n, preferred_element_type=f32) + b2

        y2 = [pointwise(a[n]) for n in range(N)]                   # N x (O, HWo)

        # ---- BN2 (batch stats in VMEM) + ReLU, lane-dense (O, HWo) stores ----
        inv2 = 1.0 / float(N * HWo)
        m2 = sum(jnp.sum(t, axis=1, keepdims=True) for t in y2) * inv2         # (O, 1)
        v2 = sum(jnp.sum((t - m2) ** 2, axis=1, keepdims=True) for t in y2) * inv2
        sc2 = p2_ref[1] * lax.rsqrt(v2 + EPS)
        sh2 = p2_ref[2] - m2 * sc2
        for n in range(N):
            o_ref[n] = jnp.maximum(y2[n] * sc2 + sh2, 0.0)

    if stride == 1:
        def kernel(x_ref, wdw_ref, mask_ref, p1_ref, wpw_ref, p2_ref, o_ref, pad_ref):
            _body(x_ref, wdw_ref, mask_ref, p1_ref, wpw_ref, p2_ref, o_ref, pad_ref)
    else:
        def kernel(x_ref, wdw_ref, mask_ref, p1_ref, wpw_ref, p2_ref, sel_ref, o_ref,
                   pad_ref):
            _body(x_ref, wdw_ref, mask_ref, p1_ref, wpw_ref, p2_ref, o_ref, pad_ref,
                  sel_ref)

    return kernel, Ho, Wo, PAD


def _full_spec(shape):
    nd = len(shape)
    return pl.BlockSpec(shape, lambda i, _nd=nd: (0,) * _nd)


# --------------------------------------------------------------------------
# DHP hypernetwork (latent outer-product -> embedding -> k*k projection), JAX glue
# --------------------------------------------------------------------------
def hyper_weight(z_out, z_in, w1, b1, w2, b2, groups):
    if groups == 1:
        Z = z_out[:, None] * z_in[None, :]            # (O, Cin)
    else:
        Z = (z_out * z_in)[:, None]                   # depthwise: (O, 1)
    E = Z[..., None] * w1 + b1                        # (O, Cg, m)
    Wk = jnp.einsum("ocm,km->ock", E, w2) + b2        # (O, Cg, k*k)
    return Wk


# --------------------------------------------------------------------------
# Module forward (non-finetuning path: forward([x, latent_vector_input]))
# --------------------------------------------------------------------------
def depthwise_separable_conv_dhp_forward(x_nchw, latent_vector_input, p, stride=1):
    x = x_nchw.astype(jnp.float32)
    N, C, H, W = x.shape
    O = p["z2"].shape[0]

    kernel, Ho, Wo, PAD = _build_fused_kernel(N, C, H, W, O, stride)
    HW, HWo = H * W, Ho * Wo

    # ----- hypernetwork weight generation (tiny, plain JAX) -----
    Wk1 = hyper_weight(p["z1"], latent_vector_input,
                       p["w1_1"], p["b1_1"], p["w2_1"], p["b2_1"], groups=C)  # (C,1,9)
    w_dw = jnp.transpose(Wk1[:, 0, :], (1, 0)).reshape(9, C, 1)               # tap-major
    Wk2 = hyper_weight(p["z2"], latent_vector_input,
                       p["w1_2"], p["b1_2"], p["w2_2"], p["b2_2"], groups=1)  # (O,C,1)
    w_pw = Wk2[:, :, 0]                                                       # (O, C)

    # ----- static per-tap validity mask over the flattened spatial axis -----
    pos = jnp.arange(HW, dtype=jnp.int32)
    h_idx, w_idx = pos // W, pos % W
    masks = []
    for k in range(9):
        dy, dx = k // 3, k % 3
        valid = ((h_idx + (dy - 1) >= 0) & (h_idx + (dy - 1) < H) &
                 (w_idx + (dx - 1) >= 0) & (w_idx + (dx - 1) < W))
        masks.append(valid)
    dw_mask = jnp.stack(masks).astype(jnp.float32).reshape(9, 1, HW)

    # folded per-channel params: [conv bias, bn gamma, bn beta]
    p1 = jnp.stack([p["bias1"], p["gamma1"], p["beta1"]])[..., None]          # (3, C, 1)
    p2 = jnp.stack([p["bias2"], p["gamma2"], p["beta2"]])[..., None]          # (3, O, 1)

    x_f = x.reshape(N, C, HW)          # NCHW -> (N, C, H*W): free, no transpose

    inputs = [x_f, w_dw, dw_mask, p1, w_pw, p2]
    if stride > 1:
        # 0/1 selection matrix mapping stride-1 flat positions -> strided positions
        src = (jnp.arange(Ho) * stride)[:, None] * W + (jnp.arange(Wo) * stride)[None, :]
        sel = (pos[:, None] == src.reshape(-1)[None, :]).astype(jnp.float32)  # (HW, HWo)
        inputs.append(sel)
    in_specs = [_full_spec(t.shape) for t in inputs]

    out_f = pl.pallas_call(
        kernel,
        out_shape=jax.ShapeDtypeStruct((N, O, HWo), jnp.float32),
        grid=(1,),
        in_specs=in_specs,
        out_specs=_full_spec((N, O, HWo)),
        scratch_shapes=[pltpu.VMEM((N, C, HW + 2 * PAD), jnp.float32)],
        compiler_params=pltpu.CompilerParams(
            dimension_semantics=("arbitrary",),
        ),
    )(*inputs)

    # (N, O, Ho*Wo) -> NCHW: free contiguous reshape, no output transpose
    return out_f.reshape(N, O, Ho, Wo)


# --------------------------------------------------------------------------
# Deterministic parameter init (shapes implied by conv_dhp(in, out, k, groups, m))
# --------------------------------------------------------------------------
def init_params(key, in_planes, out_planes, embedding_dim=8):
    ks = jax.random.split(key, 12)
    p = {}
    # layer1: conv_dhp(in, in, k=3, groups=in)
    p["z1"]   = jax.random.normal(ks[0], (in_planes,), jnp.float32)
    p["w1_1"] = 0.1 * jax.random.normal(ks[1], (embedding_dim,), jnp.float32)
    p["b1_1"] = 0.1 * jax.random.normal(ks[2], (embedding_dim,), jnp.float32)
    p["w2_1"] = 0.1 * jax.random.normal(ks[3], (9, embedding_dim), jnp.float32)
    p["b2_1"] = 0.1 * jax.random.normal(ks[4], (9,), jnp.float32)
    p["bias1"]  = jnp.zeros((in_planes,), jnp.float32)
    p["gamma1"] = jnp.ones((in_planes,), jnp.float32)
    p["beta1"]  = jnp.zeros((in_planes,), jnp.float32)
    # layer2: conv_dhp(in, out, k=1)
    p["z2"]   = jax.random.normal(ks[5], (out_planes,), jnp.float32)
    p["w1_2"] = 0.1 * jax.random.normal(ks[6], (embedding_dim,), jnp.float32)
    p["b1_2"] = 0.1 * jax.random.normal(ks[7], (embedding_dim,), jnp.float32)
    p["w2_2"] = 0.1 * jax.random.normal(ks[8], (1, embedding_dim), jnp.float32)
    p["b2_2"] = 0.1 * jax.random.normal(ks[9], (1,), jnp.float32)
    p["bias2"]  = jnp.zeros((out_planes,), jnp.float32)
    p["gamma2"] = jnp.ones((out_planes,), jnp.float32)
    p["beta2"]  = jnp.zeros((out_planes,), jnp.float32)
    return p


if __name__ == "__main__":
    key = jax.random.PRNGKey(0)
    kx, kz, kp = jax.random.split(key, 3)

    N, C, H, W = 2, 4, 16, 16     # in_planes = 4
    O = 8                         # out_planes = 8
    stride = 1

    x = jax.random.normal(kx, (N, C, H, W), jnp.float32)            # NCHW, like PyTorch
    latent_vector_input = jax.random.normal(kz, (C,), jnp.float32)  # latent of prev layer
    params = init_params(kp, C, O, embedding_dim=8)

    out = depthwise_separable_conv_dhp_forward(x, latent_vector_input, params,
                                               stride=stride)
    out = jax.block_until_ready(out)
    assert out.shape == (N, O, H, W)
    assert bool(jnp.all(jnp.isfinite(out)))
    print("KERNEL_OK")
</pallas_src>

<mosaic_0001>
module attributes {stable_mosaic.version = 11 : i64} {
  func.func @kernel(%arg0: i32, %arg1: memref<2x4x256xf32, #tpu.memory_space<vmem>>, %arg2: memref<9x4x1xf32, #tpu.memory_space<vmem>>, %arg3: memref<9x1x256xf32, #tpu.memory_space<vmem>>, %arg4: memref<3x4x1xf32, #tpu.memory_space<vmem>>, %arg5: memref<8x4xf32, #tpu.memory_space<vmem>>, %arg6: memref<3x8x1xf32, #tpu.memory_space<vmem>>, %arg7: memref<2x8x256xf32, #tpu.memory_space<vmem>>, %arg8: memref<2x4x512xf32, #tpu.memory_space<vmem>>) attributes {dimension_semantics = [#tpu.dimension_semantics<arbitrary>], iteration_bounds = array<i64: 1>, scalar_prefetch = 0 : i64, scratch_operands = 1 : i64, tpu.core_type = #tpu.core_type<tc>, window_params = [{pipeline_mode = #tpu.pipeline_mode<synchronous>, transform_indices = @transform_0, window_bounds = array<i64: 2, 4, 256>}, {pipeline_mode = #tpu.pipeline_mode<synchronous>, transform_indices = @transform_1, window_bounds = array<i64: 9, 4, 1>}, {pipeline_mode = #tpu.pipeline_mode<synchronous>, transform_indices = @transform_2, window_bounds = array<i64: 9, 1, 256>}, {pipeline_mode = #tpu.pipeline_mode<synchronous>, transform_indices = @transform_3, window_bounds = array<i64: 3, 4, 1>}, {pipeline_mode = #tpu.pipeline_mode<synchronous>, transform_indices = @transform_4, window_bounds = array<i64: 8, 4>}, {pipeline_mode = #tpu.pipeline_mode<synchronous>, transform_indices = @transform_5, window_bounds = array<i64: 3, 8, 1>}, {pipeline_mode = #tpu.pipeline_mode<synchronous>, transform_indices = @transform_6, window_bounds = array<i64: 2, 8, 256>}]} {
    %cst = arith.constant 0.000000e+00 : f32
    %0 = vector.broadcast %cst : f32 to vector<2x4x512xf32>
    %c0 = arith.constant 0 : index
    %c0_0 = arith.constant 0 : index
    %c0_1 = arith.constant 0 : index
    %1 = vector.load %arg8[%c0, %c0_0, %c0_1] : memref<2x4x512xf32, #tpu.memory_space<vmem>>, vector<2x4x512xf32>
    tpu.vector_store %arg8[%c0, %c0_0, %c0_1], %0 {strides = array<i32>} : memref<2x4x512xf32, #tpu.memory_space<vmem>>, vector<2x4x512xf32>,
    %c0_2 = arith.constant 0 : index
    %c0_3 = arith.constant 0 : index
    %c0_4 = arith.constant 0 : index
    %2 = vector.load %arg1[%c0_2, %c0_3, %c0_4] : memref<2x4x256xf32, #tpu.memory_space<vmem>>, vector<2x4x256xf32>
    %c0_5 = arith.constant 0 : index
    %c0_6 = arith.constant 0 : index
    %c128 = arith.constant 128 : index
    %3 = vector.load %arg8[%c0_5, %c0_6, %c128] : memref<2x4x512xf32, #tpu.memory_space<vmem>>, vector<2x4x256xf32>
    tpu.vector_store %arg8[%c0_5, %c0_6, %c128], %2 {strides = array<i32>} : memref<2x4x512xf32, #tpu.memory_space<vmem>>, vector<2x4x256xf32>,
    %cst_7 = arith.constant 0.000000e+00 : f32
    %4 = vector.broadcast %cst_7 : f32 to vector<2x4x256xf32>
    %c0_8 = arith.constant 0 : index
    %c0_9 = arith.constant 0 : index
    %c111 = arith.constant 111 : index
    %5 = vector.load %arg8[%c0_8, %c0_9, %c111] : memref<2x4x512xf32, #tpu.memory_space<vmem>>, vector<2x4x256xf32>
    %c0_10 = arith.constant 0 : index
    %c0_11 = arith.constant 0 : index
    %c0_12 = arith.constant 0 : index
    %6 = vector.load %arg3[%c0_10, %c0_11, %c0_12] : memref<9x1x256xf32, #tpu.memory_space<vmem>>, vector<1x1x256xf32>
    %7 = vector.shape_cast %6 : vector<1x1x256xf32> to vector<1x256xf32>
    %8 = vector.shape_cast %7 : vector<1x256xf32> to vector<1x1x256xf32>
    %c0_13 = arith.constant 0 : index
    %c0_14 = arith.constant 0 : index
    %c0_15 = arith.constant 0 : index
    %9 = vector.load %arg2[%c0_13, %c0_14, %c0_15] : memref<9x4x1xf32, #tpu.memory_space<vmem>>, vector<1x4x1xf32>
    %10 = vector.shape_cast %9 : vector<1x4x1xf32> to vector<4x1xf32>
    %11 = vector.shape_cast %10 : vector<4x1xf32> to vector<1x4x1xf32>
    %12 = vector.broadcast %8 : vector<1x1x256xf32> to vector<1x4x256xf32>
    %13 = vector.broadcast %11 : vector<1x4x1xf32> to vector<1x4x256xf32>
    %14 = arith.mulf %12, %13 : vector<1x4x256xf32>
    %15 = vector.broadcast %14 : vector<1x4x256xf32> to vector<2x4x256xf32>
    %16 = arith.mulf %5, %15 : vector<2x4x256xf32>
    %17 = arith.addf %4, %16 : vector<2x4x256xf32>
    %c0_16 = arith.constant 0 : index
    %c0_17 = arith.constant 0 : index
    %c112 = arith.constant 112 : index
    %18 = vector.load %arg8[%c0_16, %c0_17, %c112] : memref<2x4x512xf32, #tpu.memory_space<vmem>>, vector<2x4x256xf32>
    %c1 = arith.constant 1 : index
    %c0_18 = arith.constant 0 : index
    %c0_19 = arith.constant 0 : index
    %19 = vector.load %arg3[%c1, %c0_18, %c0_19] : memref<9x1x256xf32, #tpu.memory_space<vmem>>, vector<1x1x256xf32>
    %20 = vector.shape_cast %19 : vector<1x1x256xf32> to vector<1x256xf32>
    %21 = vector.shape_cast %20 : vector<1x256xf32> to vector<1x1x256xf32>
    %c1_20 = arith.constant 1 : index
    %c0_21 = arith.constant 0 : index
    %c0_22 = arith.constant 0 : index
    %22 = vector.load %arg2[%c1_20, %c0_21, %c0_22] : memref<9x4x1xf32, #tpu.memory_space<vmem>>, vector<1x4x1xf32>
    %23 = vector.shape_cast %22 : vector<1x4x1xf32> to vector<4x1xf32>
    %24 = vector.shape_cast %23 : vector<4x1xf32> to vector<1x4x1xf32>
    %25 = vector.broadcast %21 : vector<1x1x256xf32> to vector<1x4x256xf32>
    %26 = vector.broadcast %24 : vector<1x4x1xf32> to vector<1x4x256xf32>
    %27 = arith.mulf %25, %26 : vector<1x4x256xf32>
    %28 = vector.broadcast %27 : vector<1x4x256xf32> to vector<2x4x256xf32>
    %29 = arith.mulf %18, %28 : vector<2x4x256xf32>
    %30 = arith.addf %17, %29 : vector<2x4x256xf32>
    %c0_23 = arith.constant 0 : index
    %c0_24 = arith.constant 0 : index
    %c113 = arith.constant 113 : index
    %31 = vector.load %arg8[%c0_23, %c0_24, %c113] : memref<2x4x512xf32, #tpu.memory_space<vmem>>, vector<2x4x256xf32>
    %c2 = arith.constant 2 : index
    %c0_25 = arith.constant 0 : index
    %c0_26 = arith.constant 0 : index
    %32 = vector.load %arg3[%c2, %c0_25, %c0_26] : memref<9x1x256xf32, #tpu.memory_space<vmem>>, vector<1x1x256xf32>
    %33 = vector.shape_cast %32 : vector<1x1x256xf32> to vector<1x256xf32>
    %34 = vector.shape_cast %33 : vector<1x256xf32> to vector<1x1x256xf32>
    %c2_27 = arith.constant 2 : index
    %c0_28 = arith.constant 0 : index
    %c0_29 = arith.constant 0 : index
    %35 = vector.load %arg2[%c2_27, %c0_28, %c0_29] : memref<9x4x1xf32, #tpu.memory_space<vmem>>, vector<1x4x1xf32>
    %36 = vector.shape_cast %35 : vector<1x4x1xf32> to vector<4x1xf32>
    %37 = vector.shape_cast %36 : vector<4x1xf32> to vector<1x4x1xf32>
    %38 = vector.broadcast %34 : vector<1x1x256xf32> to vector<1x4x256xf32>
    %39 = vector.broadcast %37 : vector<1x4x1xf32> to vector<1x4x256xf32>
    %40 = arith.mulf %38, %39 : vector<1x4x256xf32>
    %41 = vector.broadcast %40 : vector<1x4x256xf32> to vector<2x4x256xf32>
    %42 = arith.mulf %31, %41 : vector<2x4x256xf32>
    %43 = arith.addf %30, %42 : vector<2x4x256xf32>
    %c0_30 = arith.constant 0 : index
    %c0_31 = arith.constant 0 : index
    %c127 = arith.constant 127 : index
    %44 = vector.load %arg8[%c0_30, %c0_31, %c127] : memref<2x4x512xf32, #tpu.memory_space<vmem>>, vector<2x4x256xf32>
    %c3 = arith.constant 3 : index
    %c0_32 = arith.constant 0 : index
    %c0_33 = arith.constant 0 : index
    %45 = vector.load %arg3[%c3, %c0_32, %c0_33] : memref<9x1x256xf32, #tpu.memory_space<vmem>>, vector<1x1x256xf32>
    %46 = vector.shape_cast %45 : vector<1x1x256xf32> to vector<1x256xf32>
    %47 = vector.shape_cast %46 : vector<1x256xf32> to vector<1x1x256xf32>
    %c3_34 = arith.constant 3 : index
    %c0_35 = arith.constant 0 : index
    %c0_36 = arith.constant 0 : index
    %48 = vector.load %arg2[%c3_34, %c0_35, %c0_36] : memref<9x4x1xf32, #tpu.memory_space<vmem>>, vector<1x4x1xf32>
    %49 = vector.shape_cast %48 : vector<1x4x1xf32> to vector<4x1xf32>
    %50 = vector.shape_cast %49 : vector<4x1xf32> to vector<1x4x1xf32>
    %51 = vector.broadcast %47 : vector<1x1x256xf32> to vector<1x4x256xf32>
    %52 = vector.broadcast %50 : vector<1x4x1xf32> to vector<1x4x256xf32>
    %53 = arith.mulf %51, %52 : vector<1x4x256xf32>
    %54 = vector.broadcast %53 : vector<1x4x256xf32> to vector<2x4x256xf32>
    %55 = arith.mulf %44, %54 : vector<2x4x256xf32>
    %56 = arith.addf %43, %55 : vector<2x4x256xf32>
    %c0_37 = arith.constant 0 : index
    %c0_38 = arith.constant 0 : index
    %c128_39 = arith.constant 128 : index
    %57 = vector.load %arg8[%c0_37, %c0_38, %c128_39] : memref<2x4x512xf32, #tpu.memory_space<vmem>>, vector<2x4x256xf32>
    %c4 = arith.constant 4 : index
    %c0_40 = arith.constant 0 : index
    %c0_41 = arith.constant 0 : index
    %58 = vector.load %arg3[%c4, %c0_40, %c0_41] : memref<9x1x256xf32, #tpu.memory_space<vmem>>, vector<1x1x256xf32>
    %59 = vector.shape_cast %58 : vector<1x1x256xf32> to vector<1x256xf32>
    %60 = vector.shape_cast %59 : vector<1x256xf32> to vector<1x1x256xf32>
    %c4_42 = arith.constant 4 : index
    %c0_43 = arith.constant 0 : index
    %c0_44 = arith.constant 0 : index
    %61 = vector.load %arg2[%c4_42, %c0_43, %c0_44] : memref<9x4x1xf32, #tpu.memory_space<vmem>>, vector<1x4x1xf32>
    %62 = vector.shape_cast %61 : vector<1x4x1xf32> to vector<4x1xf32>
    %63 = vector.shape_cast %62 : vector<4x1xf32> to vector<1x4x1xf32>
    %64 = vector.broadcast %60 : vector<1x1x256xf32> to vector<1x4x256xf32>
    %65 = vector.broadcast %63 : vector<1x4x1xf32> to vector<1x4x256xf32>
    %66 = arith.mulf %64, %65 : vector<1x4x256xf32>
    %67 = vector.broadcast %66 : vector<1x4x256xf32> to vector<2x4x256xf32>
    %68 = arith.mulf %57, %67 : vector<2x4x256xf32>
    %69 = arith.addf %56, %68 : vector<2x4x256xf32>
    %c0_45 = arith.constant 0 : index
    %c0_46 = arith.constant 0 : index
    %c129 = arith.constant 129 : index
    %70 = vector.load %arg8[%c0_45, %c0_46, %c129] : memref<2x4x512xf32, #tpu.memory_space<vmem>>, vector<2x4x256xf32>
    %c5 = arith.constant 5 : index
    %c0_47 = arith.constant 0 : index
    %c0_48 = arith.constant 0 : index
    %71 = vector.load %arg3[%c5, %c0_47, %c0_48] : memref<9x1x256xf32, #tpu.memory_space<vmem>>, vector<1x1x256xf32>
    %72 = vector.shape_cast %71 : vector<1x1x256xf32> to vector<1x256xf32>
    %73 = vector.shape_cast %72 : vector<1x256xf32> to vector<1x1x256xf32>
    %c5_49 = arith.constant 5 : index
    %c0_50 = arith.constant 0 : index
    %c0_51 = arith.constant 0 : index
    %74 = vector.load %arg2[%c5_49, %c0_50, %c0_51] : memref<9x4x1xf32, #tpu.memory_space<vmem>>, vector<1x4x1xf32>
    %75 = vector.shape_cast %74 : vector<1x4x1xf32> to vector<4x1xf32>
    %76 = vector.shape_cast %75 : vector<4x1xf32> to vector<1x4x1xf32>
    %77 = vector.broadcast %73 : vector<1x1x256xf32> to vector<1x4x256xf32>
    %78 = vector.broadcast %76 : vector<1x4x1xf32> to vector<1x4x256xf32>
    %79 = arith.mulf %77, %78 : vector<1x4x256xf32>
    %80 = vector.broadcast %79 : vector<1x4x256xf32> to vector<2x4x256xf32>
    %81 = arith.mulf %70, %80 : vector<2x4x256xf32>
    %82 = arith.addf %69, %81 : vector<2x4x256xf32>
    %c0_52 = arith.constant 0 : index
    %c0_53 = arith.constant 0 : index
    %c143 = arith.constant 143 : index
    %83 = vector.load %arg8[%c0_52, %c0_53, %c143] : memref<2x4x512xf32, #tpu.memory_space<vmem>>, vector<2x4x256xf32>
    %c6 = arith.constant 6 : index
    %c0_54 = arith.constant 0 : index
    %c0_55 = arith.constant 0 : index
    %84 = vector.load %arg3[%c6, %c0_54, %c0_55] : memref<9x1x256xf32, #tpu.memory_space<vmem>>, vector<1x1x256xf32>
    %85 = vector.shape_cast %84 : vector<1x1x256xf32> to vector<1x256xf32>
    %86 = vector.shape_cast %85 : vector<1x256xf32> to vector<1x1x256xf32>
    %c6_56 = arith.constant 6 : index
    %c0_57 = arith.constant 0 : index
    %c0_58 = arith.constant 0 : index
    %87 = vector.load %arg2[%c6_56, %c0_57, %c0_58] : memref<9x4x1xf32, #tpu.memory_space<vmem>>, vector<1x4x1xf32>
    %88 = vector.shape_cast %87 : vector<1x4x1xf32> to vector<4x1xf32>
    %89 = vector.shape_cast %88 : vector<4x1xf32> to vector<1x4x1xf32>
    %90 = vector.broadcast %86 : vector<1x1x256xf32> to vector<1x4x256xf32>
    %91 = vector.broadcast %89 : vector<1x4x1xf32> to vector<1x4x256xf32>
    %92 = arith.mulf %90, %91 : vector<1x4x256xf32>
    %93 = vector.broadcast %92 : vector<1x4x256xf32> to vector<2x4x256xf32>
    %94 = arith.mulf %83, %93 : vector<2x4x256xf32>
    %95 = arith.addf %82, %94 : vector<2x4x256xf32>
    %c0_59 = arith.constant 0 : index
    %c0_60 = arith.constant 0 : index
    %c144 = arith.constant 144 : index
    %96 = vector.load %arg8[%c0_59, %c0_60, %c144] : memref<2x4x512xf32, #tpu.memory_space<vmem>>, vector<2x4x256xf32>
    %c7 = arith.constant 7 : index
    %c0_61 = arith.constant 0 : index
    %c0_62 = arith.constant 0 : index
    %97 = vector.load %arg3[%c7, %c0_61, %c0_62] : memref<9x1x256xf32, #tpu.memory_space<vmem>>, vector<1x1x256xf32>
    %98 = vector.shape_cast %97 : vector<1x1x256xf32> to vector<1x256xf32>
    %99 = vector.shape_cast %98 : vector<1x256xf32> to vector<1x1x256xf32>
    %c7_63 = arith.constant 7 : index
    %c0_64 = arith.constant 0 : index
    %c0_65 = arith.constant 0 : index
    %100 = vector.load %arg2[%c7_63, %c0_64, %c0_65] : memref<9x4x1xf32, #tpu.memory_space<vmem>>, vector<1x4x1xf32>
    %101 = vector.shape_cast %100 : vector<1x4x1xf32> to vector<4x1xf32>
    %102 = vector.shape_cast %101 : vector<4x1xf32> to vector<1x4x1xf32>
    %103 = vector.broadcast %99 : vector<1x1x256xf32> to vector<1x4x256xf32>
    %104 = vector.broadcast %102 : vector<1x4x1xf32> to vector<1x4x256xf32>
    %105 = arith.mulf %103, %104 : vector<1x4x256xf32>
    %106 = vector.broadcast %105 : vector<1x4x256xf32> to vector<2x4x256xf32>
    %107 = arith.mulf %96, %106 : vector<2x4x256xf32>
    %108 = arith.addf %95, %107 : vector<2x4x256xf32>
    %c0_66 = arith.constant 0 : index
    %c0_67 = arith.constant 0 : index
    %c145 = arith.constant 145 : index
    %109 = vector.load %arg8[%c0_66, %c0_67, %c145] : memref<2x4x512xf32, #tpu.memory_space<vmem>>, vector<2x4x256xf32>
    %c8 = arith.constant 8 : index
    %c0_68 = arith.constant 0 : index
    %c0_69 = arith.constant 0 : index
    %110 = vector.load %arg3[%c8, %c0_68, %c0_69] : memref<9x1x256xf32, #tpu.memory_space<vmem>>, vector<1x1x256xf32>
    %111 = vector.shape_cast %110 : vector<1x1x256xf32> to vector<1x256xf32>
    %112 = vector.shape_cast %111 : vector<1x256xf32> to vector<1x1x256xf32>
    %c8_70 = arith.constant 8 : index
    %c0_71 = arith.constant 0 : index
    %c0_72 = arith.constant 0 : index
    %113 = vector.load %arg2[%c8_70, %c0_71, %c0_72] : memref<9x4x1xf32, #tpu.memory_space<vmem>>, vector<1x4x1xf32>
    %114 = vector.shape_cast %113 : vector<1x4x1xf32> to vector<4x1xf32>
    %115 = vector.shape_cast %114 : vector<4x1xf32> to vector<1x4x1xf32>
    %116 = vector.broadcast %112 : vector<1x1x256xf32> to vector<1x4x256xf32>
    %117 = vector.broadcast %115 : vector<1x4x1xf32> to vector<1x4x256xf32>
    %118 = arith.mulf %116, %117 : vector<1x4x256xf32>
    %119 = vector.broadcast %118 : vector<1x4x256xf32> to vector<2x4x256xf32>
    %120 = arith.mulf %109, %119 : vector<2x4x256xf32>
    %121 = arith.addf %108, %120 : vector<2x4x256xf32>
    %c0_73 = arith.constant 0 : index
    %c0_74 = arith.constant 0 : index
    %c0_75 = arith.constant 0 : index
    %122 = vector.load %arg4[%c0_73, %c0_74, %c0_75] : memref<3x4x1xf32, #tpu.memory_space<vmem>>, vector<1x4x1xf32>
    %123 = vector.shape_cast %122 : vector<1x4x1xf32> to vector<4x1xf32>
    %124 = vector.shape_cast %123 : vector<4x1xf32> to vector<1x4x1xf32>
    %125 = vector.broadcast %124 : vector<1x4x1xf32> to vector<2x4x256xf32>
    %126 = arith.addf %121, %125 : vector<2x4x256xf32>
    %cst_76 = arith.constant dense<0.000000e+00> : vector<2x4xf32>
    %127 = vector.multi_reduction <add>, %126, %cst_76 [2] : vector<2x4x256xf32> to vector<2x4xf32>
    %128 = vector.shape_cast %127 : vector<2x4xf32> to vector<2x4x1xf32>
    %cst_77 = arith.constant dense<0.000000e+00> : vector<4x1xf32>
    %129 = vector.multi_reduction <add>, %128, %cst_77 [0] : vector<2x4x1xf32> to vector<4x1xf32>
    %130 = vector.shape_cast %129 : vector<4x1xf32> to vector<1x4x1xf32>
    %cst_78 = arith.constant 0.001953125 : f32
    %131 = vector.broadcast %cst_78 : f32 to vector<1x4x1xf32>
    %132 = arith.mulf %130, %131 : vector<1x4x1xf32>
    %133 = vector.broadcast %132 : vector<1x4x1xf32> to vector<2x4x256xf32>
    %134 = arith.subf %126, %133 : vector<2x4x256xf32>
    %135 = arith.mulf %134, %134 : vector<2x4x256xf32>
    %cst_79 = arith.constant dense<0.000000e+00> : vector<2x4xf32>
    %136 = vector.multi_reduction <add>, %135, %cst_79 [2] : vector<2x4x256xf32> to vector<2x4xf32>
    %137 = vector.shape_cast %136 : vector<2x4xf32> to vector<2x4x1xf32>
    %cst_80 = arith.constant dense<0.000000e+00> : vector<4x1xf32>
    %138 = vector.multi_reduction <add>, %137, %cst_80 [0] : vector<2x4x1xf32> to vector<4x1xf32>
    %139 = vector.shape_cast %138 : vector<4x1xf32> to vector<1x4x1xf32>
    %cst_81 = arith.constant 0.001953125 : f32
    %140 = vector.broadcast %cst_81 : f32 to vector<1x4x1xf32>
    %141 = arith.mulf %139, %140 : vector<1x4x1xf32>
    %c1_82 = arith.constant 1 : index
    %c0_83 = arith.constant 0 : index
    %c0_84 = arith.constant 0 : index
    %142 = vector.load %arg4[%c1_82, %c0_83, %c0_84] : memref<3x4x1xf32, #tpu.memory_space<vmem>>, vector<1x4x1xf32>
    %143 = vector.shape_cast %142 : vector<1x4x1xf32> to vector<4x1xf32>
    %144 = vector.shape_cast %143 : vector<4x1xf32> to vector<1x4x1xf32>
    %cst_85 = arith.constant 9.99999974E-6 : f32
    %145 = vector.broadcast %cst_85 : f32 to vector<1x4x1xf32>
    %146 = arith.addf %141, %145 : vector<1x4x1xf32>
    %147 = math.rsqrt %146 : vector<1x4x1xf32>
    %148 = arith.mulf %144, %147 : vector<1x4x1xf32>
    %149 = vector.broadcast %148 : vector<1x4x1xf32> to vector<2x4x256xf32>
    %150 = arith.mulf %134, %149 : vector<2x4x256xf32>
    %c2_86 = arith.constant 2 : index
    %c0_87 = arith.constant 0 : index
    %c0_88 = arith.constant 0 : index
    %151 = vector.load %arg4[%c2_86, %c0_87, %c0_88] : memref<3x4x1xf32, #tpu.memory_space<vmem>>, vector<1x4x1xf32>
    %152 = vector.shape_cast %151 : vector<1x4x1xf32> to vector<4x1xf32>
    %153 = vector.shape_cast %152 : vector<4x1xf32> to vector<1x4x1xf32>
    %154 = vector.broadcast %153 : vector<1x4x1xf32> to vector<2x4x256xf32>
    %155 = arith.addf %150, %154 : vector<2x4x256xf32>
    %cst_89 = arith.constant 0.000000e+00 : f32
    %156 = vector.broadcast %cst_89 : f32 to vector<2x4x256xf32>
    %157 = arith.maximumf %155, %156 : vector<2x4x256xf32>
    %c0_90 = arith.constant 0 : index
    %c0_91 = arith.constant 0 : index
    %158 = vector.load %arg5[%c0_90, %c0_91] : memref<8x4xf32, #tpu.memory_space<vmem>>, vector<8x4xf32>
    %c0_92 = arith.constant 0 : index
    %c0_93 = arith.constant 0 : index
    %c0_94 = arith.constant 0 : index
    %159 = vector.load %arg6[%c0_92, %c0_93, %c0_94] : memref<3x8x1xf32, #tpu.memory_space<vmem>>, vector<1x8x1xf32>
    %160 = vector.shape_cast %159 : vector<1x8x1xf32> to vector<8x1xf32>
    %161 = vector.extract_strided_slice %157 {offsets = [0, 0, 0], sizes = [1, 4, 256], strides = [1, 1, 1]} : vector<2x4x256xf32> to vector<1x4x256xf32>
    %162 = vector.shape_cast %161 : vector<1x4x256xf32> to vector<4x256xf32>
    %cst_95 = arith.constant 0.000000e+00 : f32
    %163 = vector.broadcast %cst_95 : f32 to vector<8x256xf32>
    %164 = vector.extract_strided_slice %158 {offsets = [0, 0], sizes = [8, 1], strides = [1, 1]} : vector<8x4xf32> to vector<8x1xf32>
    %165 = vector.extract_strided_slice %162 {offsets = [0, 0], sizes = [1, 256], strides = [1, 1]} : vector<4x256xf32> to vector<1x256xf32>
    %166 = vector.broadcast %164 : vector<8x1xf32> to vector<8x256xf32>
    %167 = vector.broadcast %165 : vector<1x256xf32> to vector<8x256xf32>
    %168 = arith.mulf %166, %167 : vector<8x256xf32>
    %169 = arith.addf %163, %168 : vector<8x256xf32>
    %170 = vector.extract_strided_slice %158 {offsets = [0, 1], sizes = [8, 1], strides = [1, 1]} : vector<8x4xf32> to vector<8x1xf32>
    %171 = vector.extract_strided_slice %162 {offsets = [1, 0], sizes = [1, 256], strides = [1, 1]} : vector<4x256xf32> to vector<1x256xf32>
    %172 = vector.broadcast %170 : vector<8x1xf32> to vector<8x256xf32>
    %173 = vector.broadcast %171 : vector<1x256xf32> to vector<8x256xf32>
    %174 = arith.mulf %172, %173 : vector<8x256xf32>
    %175 = arith.addf %169, %174 : vector<8x256xf32>
    %176 = vector.extract_strided_slice %158 {offsets = [0, 2], sizes = [8, 1], strides = [1, 1]} : vector<8x4xf32> to vector<8x1xf32>
    %177 = vector.extract_strided_slice %162 {offsets = [2, 0], sizes = [1, 256], strides = [1, 1]} : vector<4x256xf32> to vector<1x256xf32>
    %178 = vector.broadcast %176 : vector<8x1xf32> to vector<8x256xf32>
    %179 = vector.broadcast %177 : vector<1x256xf32> to vector<8x256xf32>
    %180 = arith.mulf %178, %179 : vector<8x256xf32>
    %181 = arith.addf %175, %180 : vector<8x256xf32>
    %182 = vector.extract_strided_slice %158 {offsets = [0, 3], sizes = [8, 1], strides = [1, 1]} : vector<8x4xf32> to vector<8x1xf32>
    %183 = vector.extract_strided_slice %162 {offsets = [3, 0], sizes = [1, 256], strides = [1, 1]} : vector<4x256xf32> to vector<1x256xf32>
    %184 = vector.broadcast %182 : vector<8x1xf32> to vector<8x256xf32>
    %185 = vector.broadcast %183 : vector<1x256xf32> to vector<8x256xf32>
    %186 = arith.mulf %184, %185 : vector<8x256xf32>
    %187 = arith.addf %181, %186 : vector<8x256xf32>
    %188 = vector.broadcast %160 : vector<8x1xf32> to vector<8x256xf32>
    %189 = arith.addf %187, %188 : vector<8x256xf32>
    %190 = vector.extract_strided_slice %157 {offsets = [1, 0, 0], sizes = [1, 4, 256], strides = [1, 1, 1]} : vector<2x4x256xf32> to vector<1x4x256xf32>
    %191 = vector.shape_cast %190 : vector<1x4x256xf32> to vector<4x256xf32>
    %cst_96 = arith.constant 0.000000e+00 : f32
    %192 = vector.broadcast %cst_96 : f32 to vector<8x256xf32>
    %193 = vector.extract_strided_slice %158 {offsets = [0, 0], sizes = [8, 1], strides = [1, 1]} : vector<8x4xf32> to vector<8x1xf32>
    %194 = vector.extract_strided_slice %191 {offsets = [0, 0], sizes = [1, 256], strides = [1, 1]} : vector<4x256xf32> to vector<1x256xf32>
    %195 = vector.broadcast %193 : vector<8x1xf32> to vector<8x256xf32>
    %196 = vector.broadcast %194 : vector<1x256xf32> to vector<8x256xf32>
    %197 = arith.mulf %195, %196 : vector<8x256xf32>
    %198 = arith.addf %192, %197 : vector<8x256xf32>
    %199 = vector.extract_strided_slice %158 {offsets = [0, 1], sizes = [8, 1], strides = [1, 1]} : vector<8x4xf32> to vector<8x1xf32>
    %200 = vector.extract_strided_slice %191 {offsets = [1, 0], sizes = [1, 256], strides = [1, 1]} : vector<4x256xf32> to vector<1x256xf32>
    %201 = vector.broadcast %199 : vector<8x1xf32> to vector<8x256xf32>
    %202 = vector.broadcast %200 : vector<1x256xf32> to vector<8x256xf32>
    %203 = arith.mulf %201, %202 : vector<8x256xf32>
    %204 = arith.addf %198, %203 : vector<8x256xf32>
    %205 = vector.extract_strided_slice %158 {offsets = [0, 2], sizes = [8, 1], strides = [1, 1]} : vector<8x4xf32> to vector<8x1xf32>
    %206 = vector.extract_strided_slice %191 {offsets = [2, 0], sizes = [1, 256], strides = [1, 1]} : vector<4x256xf32> to vector<1x256xf32>
    %207 = vector.broadcast %205 : vector<8x1xf32> to vector<8x256xf32>
    %208 = vector.broadcast %206 : vector<1x256xf32> to vector<8x256xf32>
    %209 = arith.mulf %207, %208 : vector<8x256xf32>
    %210 = arith.addf %204, %209 : vector<8x256xf32>
    %211 = vector.extract_strided_slice %158 {offsets = [0, 3], sizes = [8, 1], strides = [1, 1]} : vector<8x4xf32> to vector<8x1xf32>
    %212 = vector.extract_strided_slice %191 {offsets = [3, 0], sizes = [1, 256], strides = [1, 1]} : vector<4x256xf32> to vector<1x256xf32>
    %213 = vector.broadcast %211 : vector<8x1xf32> to vector<8x256xf32>
    %214 = vector.broadcast %212 : vector<1x256xf32> to vector<8x256xf32>
    %215 = arith.mulf %213, %214 : vector<8x256xf32>
    %216 = arith.addf %210, %215 : vector<8x256xf32>
    %217 = vector.broadcast %160 : vector<8x1xf32> to vector<8x256xf32>
    %218 = arith.addf %216, %217 : vector<8x256xf32>
    %cst_97 = arith.constant dense<0.000000e+00> : vector<8xf32>
    %219 = vector.multi_reduction <add>, %189, %cst_97 [1] : vector<8x256xf32> to vector<8xf32>
    %220 = vector.shape_cast %219 : vector<8xf32> to vector<8x1xf32>
    %cst_98 = arith.constant 0.000000e+00 : f32
    %221 = vector.broadcast %cst_98 : f32 to vector<8x1xf32>
    %222 = arith.addf %221, %220 : vector<8x1xf32>
    %cst_99 = arith.constant dense<0.000000e+00> : vector<8xf32>
    %223 = vector.multi_reduction <add>, %218, %cst_99 [1] : vector<8x256xf32> to vector<8xf32>
    %224 = vector.shape_cast %223 : vector<8xf32> to vector<8x1xf32>
    %225 = arith.addf %222, %224 : vector<8x1xf32>
    %cst_100 = arith.constant 0.001953125 : f32
    %226 = vector.broadcast %cst_100 : f32 to vector<8x1xf32>
    %227 = arith.mulf %225, %226 : vector<8x1xf32>
    %228 = vector.broadcast %227 : vector<8x1xf32> to vector<8x256xf32>
    %229 = arith.subf %189, %228 : vector<8x256xf32>
    %230 = arith.mulf %229, %229 : vector<8x256xf32>
    %cst_101 = arith.constant dense<0.000000e+00> : vector<8xf32>
    %231 = vector.multi_reduction <add>, %230, %cst_101 [1] : vector<8x256xf32> to vector<8xf32>
    %232 = vector.shape_cast %231 : vector<8xf32> to vector<8x1xf32>
    %cst_102 = arith.constant 0.000000e+00 : f32
    %233 = vector.broadcast %cst_102 : f32 to vector<8x1xf32>
    %234 = arith.addf %233, %232 : vector<8x1xf32>
    %235 = vector.broadcast %227 : vector<8x1xf32> to vector<8x256xf32>
    %236 = arith.subf %218, %235 : vector<8x256xf32>
    %237 = arith.mulf %236, %236 : vector<8x256xf32>
    %cst_103 = arith.constant dense<0.000000e+00> : vector<8xf32>
    %238 = vector.multi_reduction <add>, %237, %cst_103 [1] : vector<8x256xf32> to vector<8xf32>
    %239 = vector.shape_cast %238 : vector<8xf32> to vector<8x1xf32>
    %240 = arith.addf %234, %239 : vector<8x1xf32>
    %cst_104 = arith.constant 0.001953125 : f32
    %241 = vector.broadcast %cst_104 : f32 to vector<8x1xf32>
    %242 = arith.mulf %240, %241 : vector<8x1xf32>
    %c1_105 = arith.constant 1 : index
    %c0_106 = arith.constant 0 : index
    %c0_107 = arith.constant 0 : index
    %243 = vector.load %arg6[%c1_105, %c0_106, %c0_107] : memref<3x8x1xf32, #tpu.memory_space<vmem>>, vector<1x8x1xf32>
    %244 = vector.shape_cast %243 : vector<1x8x1xf32> to vector<8x1xf32>
    %cst_108 = arith.constant 9.99999974E-6 : f32
    %245 = vector.broadcast %cst_108 : f32 to vector<8x1xf32>
    %246 = arith.addf %242, %245 : vector<8x1xf32>
    %247 = math.rsqrt %246 : vector<8x1xf32>
    %248 = arith.mulf %244, %247 : vector<8x1xf32>
    %c2_109 = arith.constant 2 : index
    %c0_110 = arith.constant 0 : index
    %c0_111 = arith.constant 0 : index
    %249 = vector.load %arg6[%c2_109, %c0_110, %c0_111] : memref<3x8x1xf32, #tpu.memory_space<vmem>>, vector<1x8x1xf32>
    %250 = vector.shape_cast %249 : vector<1x8x1xf32> to vector<8x1xf32>
    %251 = arith.mulf %227, %248 : vector<8x1xf32>
    %252 = arith.subf %250, %251 : vector<8x1xf32>
    %253 = vector.broadcast %248 : vector<8x1xf32> to vector<8x256xf32>
    %254 = arith.mulf %189, %253 : vector<8x256xf32>
    %255 = vector.broadcast %252 : vector<8x1xf32> to vector<8x256xf32>
    %256 = arith.addf %254, %255 : vector<8x256xf32>
    %cst_112 = arith.constant 0.000000e+00 : f32
    %257 = vector.broadcast %cst_112 : f32 to vector<8x256xf32>
    %258 = arith.maximumf %256, %257 : vector<8x256xf32>
    %c0_113 = arith.constant 0 : index
    %c0_114 = arith.constant 0 : index
    %c0_115 = arith.constant 0 : index
    %259 = vector.load %arg7[%c0_113, %c0_114, %c0_115] : memref<2x8x256xf32, #tpu.memory_space<vmem>>, vector<1x8x256xf32>
    %260 = vector.shape_cast %259 : vector<1x8x256xf32> to vector<8x256xf32>
    %261 = vector.shape_cast %258 : vector<8x256xf32> to vector<1x8x256xf32>
    tpu.vector_store %arg7[%c0_113, %c0_114, %c0_115], %261 {strides = array<i32>} : memref<2x8x256xf32, #tpu.memory_space<vmem>>, vector<1x8x256xf32>,
    %262 = vector.broadcast %248 : vector<8x1xf32> to vector<8x256xf32>
    %263 = arith.mulf %218, %262 : vector<8x256xf32>
    %264 = vector.broadcast %252 : vector<8x1xf32> to vector<8x256xf32>
    %265 = arith.addf %263, %264 : vector<8x256xf32>
    %cst_116 = arith.constant 0.000000e+00 : f32
    %266 = vector.broadcast %cst_116 : f32 to vector<8x256xf32>
    %267 = arith.maximumf %265, %266 : vector<8x256xf32>
    %c1_117 = arith.constant 1 : index
    %c0_118 = arith.constant 0 : index
    %c0_119 = arith.constant 0 : index
    %268 = vector.load %arg7[%c1_117, %c0_118, %c0_119] : memref<2x8x256xf32, #tpu.memory_space<vmem>>, vector<1x8x256xf32>
    %269 = vector.shape_cast %268 : vector<1x8x256xf32> to vector<8x256xf32>
    %270 = vector.shape_cast %267 : vector<8x256xf32> to vector<1x8x256xf32>
    tpu.vector_store %arg7[%c1_117, %c0_118, %c0_119], %270 {strides = array<i32>} : memref<2x8x256xf32, #tpu.memory_space<vmem>>, vector<1x8x256xf32>,
    return
  }
  func.func @transform_0(%arg0: i32) -> (i32, i32, i32) {
    %c0_i32 = arith.constant 0 : i32
    %c0_i32_0 = arith.constant 0 : i32
    %c0_i32_1 = arith.constant 0 : i32
    %c0_i32_2 = arith.constant 0 : i32
    return %c0_i32, %c0_i32_0, %c0_i32_1 : i32, i32, i32
  }
  func.func @transform_1(%arg0: i32) -> (i32, i32, i32) {
    %c0_i32 = arith.constant 0 : i32
    %c0_i32_0 = arith.constant 0 : i32
    %c0_i32_1 = arith.constant 0 : i32
    %c0_i32_2 = arith.constant 0 : i32
    return %c0_i32, %c0_i32_0, %c0_i32_1 : i32, i32, i32
  }
  func.func @transform_2(%arg0: i32) -> (i32, i32, i32) {
    %c0_i32 = arith.constant 0 : i32
    %c0_i32_0 = arith.constant 0 : i32
    %c0_i32_1 = arith.constant 0 : i32
    %c0_i32_2 = arith.constant 0 : i32
    return %c0_i32, %c0_i32_0, %c0_i32_1 : i32, i32, i32
  }
  func.func @transform_3(%arg0: i32) -> (i32, i32, i32) {
    %c0_i32 = arith.constant 0 : i32
    %c0_i32_0 = arith.constant 0 : i32
    %c0_i32_1 = arith.constant 0 : i32
    %c0_i32_2 = arith.constant 0 : i32
    return %c0_i32, %c0_i32_0, %c0_i32_1 : i32, i32, i32
  }
  func.func @transform_4(%arg0: i32) -> (i32, i32) {
    %c0_i32 = arith.constant 0 : i32
    %c0_i32_0 = arith.constant 0 : i32
    %c0_i32_1 = arith.constant 0 : i32
    return %c0_i32, %c0_i32_0 : i32, i32
  }
  func.func @transform_5(%arg0: i32) -> (i32, i32, i32) {
    %c0_i32 = arith.constant 0 : i32
    %c0_i32_0 = arith.constant 0 : i32
    %c0_i32_1 = arith.constant 0 : i32
    %c0_i32_2 = arith.constant 0 : i32
    return %c0_i32, %c0_i32_0, %c0_i32_1 : i32, i32, i32
  }
  func.func @transform_6(%arg0: i32) -> (i32, i32, i32) {
    %c0_i32 = arith.constant 0 : i32
    %c0_i32_0 = arith.constant 0 : i32
    %c0_i32_1 = arith.constant 0 : i32
    %c0_i32_2 = arith.constant 0 : i32
    return %c0_i32, %c0_i32_0, %c0_i32_1 : i32, i32, i32
  }
}

</mosaic_0001>

<bundles_post_ra>
// kernel: tpu_custom_call.1
= control target key start
LH: loop header
LB: loop body
LE: loop exit
PB: predicated region body
PF: predicated region fallthrough
CT: control target
= control target key end

     0   :  { %v1293_v2 = vmov 0   ;;  %s1823_s0 = inlined_call_operand.vmem [shape: f32[2,4,256], index: 0, kind: input, shape index: {}]   ;;  %s1824_s1 = inlined_call_operand.vmem [shape: f32[9,4,1], index: 1, kind: input, shape index: {}]   ;;  %s1825_s2 = inlined_call_operand.vmem [shape: f32[9,1,256], index: 2, kind: input, shape index: {}]   ;;  %s1826_s3 = inlined_call_operand.vmem [shape: f32[3,4,1], index: 3, kind: input, shape index: {}]   ;;  %s1827_s4 = inlined_call_operand.vmem [shape: f32[8,4], index: 4, kind: input, shape index: {}]   ;;  %s1828_s5 = inlined_call_operand.vmem [shape: f32[3,8,1], index: 5, kind: input, shape index: {}]   ;;  %s1829_s6 = inlined_call_operand.hbm [shape: f32[2,8,256], index: 6, kind: output, shape index: {}]  }
   0x1   :  { %v1222_v0 = vld [vmem:[%s1824_s1 + $0xc] sm:$0xf]  ;;  %v1218_v1 = vld [vmem:[%s1824_s1 + $0x4] sm:$0xf]  ;;  %1259 = vset.pattern.permute.xlu1 %v1293_v2  ;;  %1258 = vset.pattern.permute.xlu0 %v1293_v2  ;;  %v1226_v3 = vld [vmem:[%s1824_s1 + $0x14] sm:$0xf] }
   0x2   :  { %234 = vperm.xlu1 %1259, %v1222_v0   ;;  %95 = vperm.xlu0 %1258, %v1218_v1   ;;  %v1220_v4 = vld [vmem:[%s1824_s1 + $0x8] sm:$0xf] }
   0x3   :  { %11 = vsyncpa [#allocation4], 0  ;;  %v1230_v5 = vld [vmem:[%s1824_s1 + $0x1c] sm:$0xf]  ;;  %v1228_v6 = vld [vmem:[%s1824_s1 + $0x18] sm:$0xf]  ;;  %v39_v13 = vlaneseq }
   0x4   :  { %v1232_v7 = vld [vmem:[%s1824_s1 + $0x20] sm:$0xf]  ;;  %v1224_v9 = vld [vmem:[%s1824_s1 + $0x10] sm:$0xf]  ;;  %v1294_v10 = vmov 0.0   ;;  %v1381_v11 = vld [vmem:[%s1823_s0 + $0x8] sm:$0xff] }
   0x5   :  { %v37_v8 = vld [vmem:[%s1824_s1] sm:$0xf]  ;;  %26 = vst [vmem:[#allocation2 + $0x10] sm:$0xff] %v1294_v10  ;;  %27 = vst [vmem:[#allocation2 + $0x18] sm:$0xff] %v1294_v10  ;;  %v1390_v14 = vshrl.u32 %v39_v13, 7  ;;  %s1295_s29 = smov 112  }
   0x6   :  { %349 = vperm.xlu1 %1259, %v1226_v3   ;;  %165 = vperm.xlu0 %1258, %v1220_v4   ;;  %24 = vst [vmem:[#allocation2] sm:$0xff] %v1294_v10  ;;  %25 = vst [vmem:[#allocation2 + $0x8] sm:$0xff] %v1294_v10  ;;  %v1386_v12 = vld [vmem:[%s1823_s0] sm:$0xff]  ;;  %v1225_v26 = vld [vmem:[%s1825_s2 + $0xa] sm:$0x3]  ;;  %s1296_s10 = smov 113  }
   0x7   :  { %31 = vst [vmem:[#allocation2 + $0x14] sm:$0xff] %v1381_v11  ;;  %30 = vst [vmem:[#allocation2 + $0x4] sm:$0xff] %v1386_v12  ;;  %v1393_v15 = vsub.s32 0, %v1390_v14  ;;  %v1396_v16 = vsub.s32 1, %v1390_v14  ;;  %v1217_v17 = vld [vmem:[%s1825_s2 + $0x2] sm:$0x3] }
   0x8   :  { %v1221_v18 = vld [vmem:[%s1825_s2 + $0x6] sm:$0x3]  ;;  %v1219_v23 = vld [vmem:[%s1825_s2 + $0x4] sm:$0x3]  ;;  %v1227_v33 = vld [vmem:[%s1825_s2 + $0xc] sm:$0x3] }
   0x9   :  { %v86_v19 = vrot.slane %v1217_v17, %v1393_v15  ;;  %v90_v20 = vrot.slane %v1217_v17, %v1396_v16  ;;  %v225_v21 = vrot.slane %v1221_v18, %v1393_v15  ;;  %v229_v22 = vrot.slane %v1221_v18, %v1396_v16  ;;  %v1229_v37 = vld [vmem:[%s1825_s2 + $0xe] sm:$0x3]  ;;  %v1231_v46 = vld [vmem:[%s1825_s2 + $0x10] sm:$0x3]  ;;  %v36_v51 = vld [vmem:[%s1825_s2] sm:$0x3] }
   0xa   :  { %483 = vperm.xlu1 %1259, %v1230_v5   ;;  %416 = vperm.xlu0 %1258, %v1228_v6   ;;  %v156_v29 = vrot.slane %v1219_v23, %v1393_v15  ;;  %v160_v30 = vrot.slane %v1219_v23, %v1396_v16  ;;  %v340_v35 = vrot.slane %v1225_v26, %v1393_v15  ;;  %s1297_s11 = smov 127   ;;  %v1223_v60 = vld [vmem:[%s1825_s2 + $0x8] sm:$0x3]  ;;  %s1298_s14 = smov 1   ;;  %vm106_vm0 = vcmask 916480  }
   0xb   :  { %v344_v36 = vrot.slane %v1225_v26, %v1396_v16  ;;  %v407_v42 = vrot.slane %v1227_v33, %v1393_v15  ;;  %v411_v43 = vrot.slane %v1227_v33, %v1396_v16  ;;  %v474_v44 = vrot.slane %v1229_v37, %v1393_v15  ;;  %s1299_s15 = smov 15   ;;  %s1300_s2 = smov 16  }
   0xc   :  { %v478_v50 = vrot.slane %v1229_v37, %v1396_v16  ;;  %v541_v56 = vrot.slane %v1231_v46, %v1393_v15  ;;  %v545_v57 = vrot.slane %v1231_v46, %v1396_v16  ;;  %v42_v58 = vrot.slane %v36_v51, %v1393_v15  ;;  %s1301_s16 = smov 17   ;;  %s1302_s1 = smov 111  }
   0xd   :  { %v46_v59 = vrot.slane %v36_v51, %v1396_v16  ;;  %v290_v6 = vrot.slane %v1223_v60, %v1393_v15  ;;  %s1303_s19 = smov 110   ;;  %s1304_s20 = smov 126   ;;  %vm176_vm1 = vcmask 924672   ;;  %vm132_vm2 = vcmask 1039360  }
   0xe   :  { %550 = vperm.xlu0 %1258, %v1232_v7   ;;  %51 = vperm.xlu1 %1259, %v37_v8   ;;  %v294_v7 = vrot.slane %v1223_v60, %v1396_v16  ;;  %v75_v26 = vld [vmem:[#allocation2 + $0x8] sm:$0xf]  ;;  %s1305_s0 = smov 96   ;;  %s1306_s21 = smov 95   ;;  %vm360_vm3 = vcmask 7168   ;;  %vm427_vm4 = vcmask 121856  }
   0xf   :  { %vm494_vm5 = vcmask 130048   ;;  %vm561_vm6 = vcmask 138240   ;;  %s1307_s22 = smov 94   ;;  %vm130_vm7 = vcmask 1043456   ;;  %vm62_vm8 = vcmask 908288  }
  0x10   :  { %vm201_vm9 = vcmask 1031168   ;;  %vm382_vm10 = vcmask 900096   ;;  %vm449_vm11 = vcmask 785408   ;;  %vm516_vm12 = vcmask 777216  }
  0x11   :  { %vm583_vm13 = vcmask 769024  }
  0x12   :  { %299 = vperm.xlu0 %1258, %v1224_v9  }
  0x81   :  { %v235_v24 = vpop.permute.xlu1 %234  ;;  %v96_v25 = vpop.permute.xlu0 %95 }
  0x82   :  { %v98_v27 = vmul.f32 %v96_v25, %v86_v19  ;;  %v99_v28 = vmul.f32 %v96_v25, %v90_v20  ;;  %v237_v31 = vmul.f32 %v235_v24, %v225_v21  ;;  %v238_v32 = vmul.f32 %v235_v24, %v229_v22  ;;  %v596_v22 = vld [vmem:[%s1826_s3] sm:$0xf] }
  0x84   :  { %v102_v34 = vcombine.low %v98_v27, %v99_v28  ;;  %v241_v45 = vcombine.low %v237_v31, %v238_v32 }
  0x85   :  { %v350_v38 = vpop.permute.xlu1 %349  ;;  %v166_v39 = vpop.permute.xlu0 %165 }
  0x86   :  { %v168_v40 = vmul.f32 %v166_v39, %v156_v29  ;;  %v169_v41 = vmul.f32 %v166_v39, %v160_v30  ;;  %103 = vrot.lane.b32.xlu1 %v102_v34, %s1295_s29  ;;  %v352_v47 = vmul.f32 %v350_v38, %v340_v35  ;;  %v353_v48 = vmul.f32 %v350_v38, %v344_v36  ;;  %v77_v30 = vld [vmem:[#allocation2 + $0x18] sm:$0xf]  ;;  %v331_v35 = vld [vmem:[#allocation2 + $0x1c] sm:$0xf]  ;;  %v145_v36 = vld [vmem:[#allocation2 + $0x8] sm:$0xf] }
  0x88   :  { %v172_v49 = vcombine.low %v168_v40, %v169_v41  ;;  %v356_v0 = vcombine.low %v352_v47, %v353_v48 }
  0x89   :  { %v484_v52 = vpop.permute.xlu1 %483  ;;  %v417_v53 = vpop.permute.xlu0 %416 }
  0x8a   :  { %v419_v54 = vmul.f32 %v417_v53, %v407_v42  ;;  %v420_v55 = vmul.f32 %v417_v53, %v411_v43  ;;  %173 = vrot.lane.b32.xlu0 %v172_v49, %s1296_s10  ;;  %242 = vrot.lane.b32.xlu1 %v241_v45, %s1297_s11  ;;  %v486_v61 = vmul.f32 %v484_v52, %v474_v44  ;;  %v398_v43 = vld [vmem:[#allocation2 + $0x1c] sm:$0xf]  ;;  %v147_v44 = vld [vmem:[#allocation2 + $0x18] sm:$0xf]  ;;  %v1458_v53 = vld [vmem:[#allocation2] sm:$0xff] }
  0x8b   :  { %v487_v62 = vmul.f32 %v484_v52, %v478_v50  ;;  %v465_v49 = vld [vmem:[#allocation2 + $0x1c] sm:$0xf]  ;;  %v214_v50 = vld [vmem:[#allocation2 + $0x8] sm:$0xf] }
  0x8c   :  { %v423_v63 = vcombine.low %v419_v54, %v420_v55  ;;  %v216_v55 = vld [vmem:[#allocation2 + $0x18] sm:$0xf] }
  0x8d   :  { %v551_v1 = vpop.permute.xlu0 %550  ;;  %v52_v3 = vpop.permute.xlu1 %51  ;;  %v490_v8 = vcombine.low %v486_v61, %v487_v62 }
  0x8e   :  { %v553_v4 = vmul.f32 %v551_v1, %v541_v56  ;;  %v554_v5 = vmul.f32 %v551_v1, %v545_v57  ;;  %357 = vrot.lane.b32.xlu0 %v356_v0, %s1298_s14  ;;  %424 = vrot.lane.b32.xlu1 %v423_v63, %s1299_s15  ;;  %v54_v10 = vmul.f32 %v52_v3, %v42_v58  ;;  %v1464_v58 = vld [vmem:[#allocation2 + $0x10] sm:$0xff]  ;;  %v396_v63 = vld [vmem:[#allocation2 + $0xc] sm:$0xf] }
  0x8f   :  { %v55_v13 = vmul.f32 %v52_v3, %v46_v59  ;;  %v329_v59 = vld [vmem:[#allocation2 + $0xc] sm:$0xf] }
  0x90   :  { %v557_v9 = vcombine.low %v553_v4, %v554_v5  ;;  %v463_v3 = vld [vmem:[#allocation2 + $0xc] sm:$0xf] }
  0x91   :  { %v300_v17 = vpop.permute.xlu0 %299  ;;  %v58_v20 = vcombine.low %v54_v10, %v55_v13 }
  0x92   :  { %v302_v18 = vmul.f32 %v300_v17, %v290_v6  ;;  %v303_v19 = vmul.f32 %v300_v17, %v294_v7  ;;  %491 = vrot.lane.b32.xlu0 %v490_v8, %s1300_s2  ;;  %558 = vrot.lane.b32.xlu1 %v557_v9, %s1301_s16 }
  0x94   :  { %v306_v21 = vcombine.low %v302_v18, %v303_v19 }
  0x96   :  { %59 = vrot.lane.b32.xlu0 %v58_v20, %s1302_s1  ;;  %599 = vperm.xlu1 %1259, %v596_v22   ;;  %v309_v23 = vmul.f32 %v306_v21, %v1381_v11  ;;  %v308_v24 = vmul.f32 %v306_v21, %v1386_v12 }
  0x9a   :  { %314 = vrot.lane.b32.xlu0 %v309_v23, %s1302_s1  ;;  %312 = vrot.lane.b32.xlu1 %v308_v24, %s1302_s1 }
  0xf8   :  { %v104_v25 = vpop.permute.xlu1 %103 }
  0xf9   :  { %v105_v27 = vrot.slane %v104_v25, 4 }
  0xfb   :  { %v111_v28 = vmul.f32 %v105_v27, %v75_v26  ;;  %v113_v33 = vmul.f32 %v105_v27, %v77_v30  ;;  %v107_v54 = vsel %vm106_vm0, %v105_v27, %v104_v25  ;;  %v530_v26 = vld [vmem:[#allocation2 + $0xc] sm:$0xf]  ;;  %v532_v30 = vld [vmem:[#allocation2 + $0x1c] sm:$0xf] }
  0xfc   :  { %v174_v29 = vpop.permute.xlu0 %173  ;;  %v243_v31 = vpop.permute.xlu1 %242  ;;  %v110_v56 = vmul.f32 %v107_v54, %v1458_v53  ;;  %v112_v60 = vmul.f32 %v107_v54, %v1464_v58 }
  0xfd   :  { %120 = vrot.lane.b32.xlu0 %v111_v28, %s1297_s11  ;;  %v175_v32 = vrot.slane %v174_v29, 4  ;;  %v244_v45 = vrot.slane %v243_v31, 4 }
  0xff   :  { %v181_v41 = vmul.f32 %v175_v32, %v145_v36  ;;  %v183_v48 = vmul.f32 %v175_v32, %v147_v44  ;;  %v249_v52 = vmul.f32 %v244_v45, %v214_v50  ;;  %v251_v57 = vmul.f32 %v244_v45, %v216_v55 }
 0x100   :  { %v358_v34 = vpop.permute.xlu0 %357  ;;  %v425_v38 = vpop.permute.xlu1 %424  ;;  %v177_v62 = vsel %vm176_vm1, %v175_v32, %v174_v29  ;;  %v245_v6 = vsel %vm132_vm2, %v244_v45, %v243_v31 }
 0x101   :  { %v359_v37 = vrot.slane %v358_v34, 4  ;;  %124 = vrot.lane.b32.xlu0 %v113_v33, %s1297_s11  ;;  %v426_v39 = vrot.slane %v425_v38, 4  ;;  %v180_v0 = vmul.f32 %v177_v62, %v1458_v53  ;;  %v182_v4 = vmul.f32 %v177_v62, %v1464_v58  ;;  %v33_v62 = vld [vmem:[#allocation2 + $0x8] sm:$0xf] }
 0x102   :  { %v248_v8 = vmul.f32 %v245_v6, %v1458_v53  ;;  %v250_v17 = vmul.f32 %v245_v6, %v1464_v58 }
 0x103   :  { %v367_v40 = vmul.f32 %v359_v37, %v331_v35  ;;  %v434_v47 = vmul.f32 %v426_v39, %v398_v43  ;;  %v365_v61 = vmul.f32 %v359_v37, %v329_v59  ;;  %v432_v1 = vmul.f32 %v426_v39, %v396_v63 }
 0x104   :  { %v492_v42 = vpop.permute.xlu0 %491  ;;  %v361_v7 = vsel %vm360_vm3, %v359_v37, %v358_v34  ;;  %v428_v10 = vsel %vm427_vm4, %v426_v39, %v425_v38  ;;  %v559_v13 = vpop.permute.xlu1 %558 }
 0x105   :  { %378 = vrot.lane.b32.xlu1 %v367_v40, %s1303_s19  ;;  %190 = vrot.lane.b32.xlu0 %v181_v41, %s1304_s20  ;;  %v493_v46 = vrot.slane %v492_v42, 4  ;;  %v366_v9 = vmul.f32 %v361_v7, %v1381_v11  ;;  %v433_v18 = vmul.f32 %v428_v10, %v1381_v11  ;;  %v560_v20 = vrot.slane %v559_v13, 4 }
 0x106   :  { %v364_v21 = vmul.f32 %v361_v7, %v1386_v12  ;;  %v431_v24 = vmul.f32 %v428_v10, %v1386_v12 }
 0x107   :  { %v501_v51 = vmul.f32 %v493_v46, %v465_v49  ;;  %v499_v5 = vmul.f32 %v493_v46, %v463_v3  ;;  %v495_v19 = vsel %vm494_vm5, %v493_v46, %v492_v42  ;;  %v562_v23 = vsel %vm561_vm6, %v560_v20, %v559_v13 }
 0x108   :  { %v498_v22 = vmul.f32 %v495_v19, %v1386_v12  ;;  %v565_v25 = vmul.f32 %v562_v23, %v1386_v12  ;;  %v500_v27 = vmul.f32 %v495_v19, %v1381_v11  ;;  %v566_v28 = vmul.f32 %v560_v20, %v530_v26  ;;  %v60_v32 = vpop.permute.xlu0 %59 }
 0x109   :  { %445 = vrot.lane.b32.xlu1 %v434_v47, %s1305_s0  ;;  %194 = vrot.lane.b32.xlu0 %v183_v48, %s1304_s20  ;;  %v567_v29 = vmul.f32 %v562_v23, %v1381_v11  ;;  %v568_v31 = vmul.f32 %v560_v20, %v532_v30  ;;  %v1519_v49 = vrot.slane %v60_v32, 4  ;;  %v1308_v20 = vmov 839922192  }
 0x10b   :  { %v67_v10 = vmul.f32 %v1519_v49, %v33_v62 }
 0x10c   :  { %v1497_v33 = vpop.permute.xlu0 %314 }
 0x10d   :  { %512 = vrot.lane.b32.xlu1 %v501_v51, %s1306_s21  ;;  %258 = vrot.lane.b32.xlu0 %v249_v52, %s1295_s29 }
 0x111   :  { %262 = vrot.lane.b32.xlu0 %v251_v57, %s1295_s29  ;;  %118 = vrot.lane.b32.xlu1 %v110_v56, %s1297_s11 }
 0x115   :  { %374 = vrot.lane.b32.xlu0 %v365_v61, %s1303_s19  ;;  %122 = vrot.lane.b32.xlu1 %v112_v60, %s1297_s11  ;;  %v1499_v12 = vpop.permute.xlu1 %599  ;;  %v63_v61 = vsel %vm62_vm8, %v1519_v49, %v60_v32 }
 0x119   :  { %441 = vrot.lane.b32.xlu0 %v432_v1, %s1305_s0  ;;  %188 = vrot.lane.b32.xlu1 %v180_v0, %s1304_s20  ;;  %v1501_v35 = vpop.permute.xlu1 %312 }
 0x11a   :  { %v316_v32 = vrot.slane %v1501_v35, 4 }
 0x11d   :  { %508 = vrot.lane.b32.xlu0 %v499_v5, %s1306_s21  ;;  %192 = vrot.lane.b32.xlu1 %v182_v4, %s1304_s20 }
 0x121   :  { %376 = vrot.lane.b32.xlu0 %v366_v9, %s1303_s19  ;;  %256 = vrot.lane.b32.xlu1 %v248_v8, %s1295_s29  ;;  %v66_v9 = vmul.f32 %v1458_v53, %v63_v61 }
 0x125   :  { %443 = vrot.lane.b32.xlu0 %v433_v18, %s1305_s0  ;;  %260 = vrot.lane.b32.xlu1 %v250_v17, %s1295_s29  ;;  %v68_v17 = vmul.f32 %v1464_v58, %v63_v61  ;;  %v317_v58 = vrot.slane %v1497_v33, 4 }
 0x129   :  { %506 = vrot.lane.b32.xlu0 %v498_v22, %s1306_s21  ;;  %372 = vrot.lane.b32.xlu1 %v364_v21, %s1303_s19  ;;  %v602_v21 = vunpack.c.l.s4 %v1308_v20 }
 0x12d   :  { %573 = vrot.lane.b32.xlu0 %v565_v25, %s1307_s22  ;;  %439 = vrot.lane.b32.xlu1 %v431_v24, %s1305_s0 }
 0x131   :  { %575 = vrot.lane.b32.xlu0 %v566_v28, %s1307_s22  ;;  %510 = vrot.lane.b32.xlu1 %v500_v27, %s1306_s21 }
 0x135   :  { %577 = vrot.lane.b32.xlu1 %v567_v29, %s1307_s22 }
 0x139   :  { %579 = vrot.lane.b32.xlu1 %v568_v31, %s1307_s22 }
 0x16f   :  { %v121_v34 = vpop.permute.xlu0 %120 }
 0x170   :  { %v127_v51 = vrot.slane %v121_v34, 4  ;;  %v141_v22 = vadd.f32 %v121_v34, %v67_v10 }
 0x173   :  { %v1503_v36 = vpop.permute.xlu0 %124 }
 0x174   :  { %v129_v56 = vrot.slane %v1503_v36, 4 }
 0x177   :  { %v1505_v37 = vpop.permute.xlu1 %378  ;;  %v191_v38 = vpop.permute.xlu0 %190 }
 0x178   :  { %v197_v59 = vrot.slane %v191_v38, 4  ;;  %v210_v30 = vadd.f32 %v191_v38, %v141_v22  ;;  %v319_v38 = vsel %vm62_vm8, %v317_v58, %v1497_v33 }
 0x17b   :  { %v1507_v39 = vpop.permute.xlu1 %445  ;;  %v1509_v11 = vpop.permute.xlu0 %194 }
 0x17c   :  { %v199_v63 = vrot.slane %v1509_v11, 4 }
 0x17f   :  { %v1511_v40 = vpop.permute.xlu1 %512  ;;  %v259_v41 = vpop.permute.xlu0 %258 }
 0x180   :  { %v265_v5 = vrot.slane %v259_v41, 4 }
 0x183   :  { %v1513_v42 = vpop.permute.xlu0 %262  ;;  %v119_v43 = vpop.permute.xlu1 %118 }
 0x184   :  { %v126_v48 = vrot.slane %v119_v43, 4  ;;  %v267_v53 = vrot.slane %v1513_v42, 4 }
 0x186   :  { %v131_v60 = vsel %vm130_vm7, %v126_v48, %v127_v51 }
 0x187   :  { %v1515_v44 = vpop.permute.xlu0 %374  ;;  %v123_v45 = vpop.permute.xlu1 %122  ;;  %v133_v6 = vsel %vm132_vm2, %v119_v43, %v131_v60 }
 0x188   :  { %v128_v50 = vrot.slane %v123_v45, 4  ;;  %v140_v23 = vadd.f32 %v133_v6, %v66_v9 }
 0x18a   :  { %v134_v0 = vsel %vm130_vm7, %v128_v50, %v129_v56 }
 0x18b   :  { %v1517_v46 = vpop.permute.xlu0 %441  ;;  %v189_v47 = vpop.permute.xlu1 %188  ;;  %v135_v13 = vsel %vm132_vm2, %v123_v45, %v134_v0  ;;  %v277_v45 = vadd.f32 %v259_v41, %v210_v30 }
 0x18c   :  { %v196_v52 = vrot.slane %v189_v47, 4  ;;  %v142_v27 = vadd.f32 %v135_v13, %v68_v17 }
 0x18e   :  { %v200_v1 = vsel %vm130_vm7, %v196_v52, %v197_v59  ;;  %v603_v52 = vunpack.c.0.s8 %v602_v21  ;;  %v318_v59 = vsel %vm62_vm8, %v316_v32, %v1501_v35 }
 0x18f   :  { %v1521_v54 = vpop.permute.xlu0 %508  ;;  %v193_v55 = vpop.permute.xlu1 %192  ;;  %v202_v18 = vsel %vm201_vm9, %v189_v47, %v200_v1 }
 0x190   :  { %v198_v57 = vrot.slane %v193_v55, 4  ;;  %v209_v31 = vadd.f32 %v202_v18, %v140_v23  ;;  %v1561_v6 = vsub.s32 %v603_v52, %v1390_v14 }
 0x192   :  { %v203_v7 = vsel %vm130_vm7, %v198_v57, %v199_v63  ;;  %v325_v63 = vadd.f32 %v316_v32, %v277_v45  ;;  %v607_v30 = vrot.slane %v1499_v12, %v1561_v6 }
 0x193   :  { %v1530_v3 = vpop.permute.xlu0 %376  ;;  %v257_v4 = vpop.permute.xlu1 %256  ;;  %v204_v24 = vsel %vm201_vm9, %v193_v55, %v203_v7  ;;  %v35_v55 = vld [vmem:[#allocation2 + $0x18] sm:$0xf] }
 0x194   :  { %v264_v8 = vrot.slane %v257_v4, 4  ;;  %v211_v43 = vadd.f32 %v204_v24, %v142_v27  ;;  %v381_v41 = vrot.slane %v1530_v3, 4  ;;  %v69_v62 = vmul.f32 %v1519_v49, %v35_v55 }
 0x196   :  { %v268_v19 = vsel %vm130_vm7, %v264_v8, %v265_v5  ;;  %v143_v8 = vadd.f32 %v1503_v36, %v69_v62 }
 0x197   :  { %v1541_v25 = vpop.permute.xlu0 %443  ;;  %v261_v26 = vpop.permute.xlu1 %260  ;;  %v269_v28 = vsel %vm106_vm0, %v257_v4, %v268_v19 }
 0x198   :  { %v266_v29 = vrot.slane %v261_v26, 4  ;;  %v276_v47 = vadd.f32 %v269_v28, %v209_v31  ;;  %v448_v49 = vrot.slane %v1541_v25, 4  ;;  %v212_v18 = vadd.f32 %v1509_v11, %v143_v8 }
 0x19a   :  { %v270_v34 = vsel %vm130_vm7, %v266_v29, %v267_v53  ;;  %v324_v1 = vadd.f32 %v318_v59, %v276_v47  ;;  %v279_v53 = vadd.f32 %v1513_v42, %v212_v18  ;;  %v452_v11 = vsel %vm449_vm11, %v448_v49, %v1541_v25 }
 0x19b   :  { %v271_v48 = vsel %vm106_vm0, %v261_v26, %v270_v34  ;;  %v507_v50 = vpop.permute.xlu0 %506  ;;  %v373_v51 = vpop.permute.xlu1 %372 }
 0x19c   :  { %v278_v56 = vadd.f32 %v271_v48, %v211_v43  ;;  %v380_v57 = vrot.slane %v373_v51, 4  ;;  %v514_v7 = vrot.slane %v507_v50, 4  ;;  %v327_v45 = vadd.f32 %v317_v58, %v279_v53 }
 0x19e   :  { %v383_v60 = vsel %vm382_vm10, %v380_v57, %v373_v51  ;;  %v384_v61 = vsel %vm382_vm10, %v380_v57, %v1515_v44  ;;  %v326_v0 = vadd.f32 %v319_v38, %v278_v56  ;;  %v385_v44 = vsel %vm382_vm10, %v381_v41, %v1530_v3 }
 0x19f   :  { %v574_v4 = vpop.permute.xlu0 %573  ;;  %v440_v5 = vpop.permute.xlu1 %439  ;;  %v391_v9 = vadd.f32 %v383_v60, %v324_v1  ;;  %v392_v10 = vadd.f32 %v384_v61, %v325_v63  ;;  %v517_v23 = vsel %vm516_vm12, %v514_v7, %v507_v50  ;;  %v518_v3 = vsel %vm516_vm12, %v514_v7, %v1521_v54 }
 0x1a0   :  { %v447_v35 = vrot.slane %v440_v5, 4  ;;  %v393_v22 = vadd.f32 %v385_v44, %v326_v0  ;;  %v581_v24 = vrot.slane %v574_v4, 4  ;;  %v386_v54 = vsel %vm382_vm10, %v381_v41, %v1505_v37 }
 0x1a1   :  { %v453_v50 = vsel %vm449_vm11, %v448_v49, %v1507_v39  ;;  %v394_v51 = vadd.f32 %v386_v54, %v327_v45 }
 0x1a2   :  { %v450_v13 = vsel %vm449_vm11, %v447_v35, %v440_v5  ;;  %v451_v17 = vsel %vm449_vm11, %v447_v35, %v1517_v46  ;;  %v460_v32 = vadd.f32 %v452_v11, %v393_v22  ;;  %v584_v42 = vsel %vm583_vm13, %v581_v24, %v574_v4 }
 0x1a3   :  { %v458_v19 = vadd.f32 %v450_v13, %v391_v9  ;;  %v576_v20 = vpop.permute.xlu0 %575  ;;  %v459_v21 = vadd.f32 %v451_v17, %v392_v10  ;;  %v511_v36 = vpop.permute.xlu1 %510  ;;  %v461_v56 = vadd.f32 %v453_v50, %v394_v51 }
 0x1a4   :  { %v515_v26 = vrot.slane %v511_v36, 4  ;;  %v585_v46 = vsel %vm583_vm13, %v581_v24, %v576_v20 }
 0x1a5   :  { %v525_v27 = vadd.f32 %v517_v23, %v458_v19  ;;  %v526_v28 = vadd.f32 %v518_v3, %v459_v21 }
 0x1a6   :  { %v519_v29 = vsel %vm516_vm12, %v515_v26, %v511_v36  ;;  %v520_v37 = vsel %vm516_vm12, %v515_v26, %v1511_v40 }
 0x1a7   :  { %v593_v31 = vadd.f32 %v585_v46, %v526_v28  ;;  %v578_v43 = vpop.permute.xlu1 %577  ;;  %v527_v25 = vadd.f32 %v519_v29, %v460_v32  ;;  %v592_v48 = vadd.f32 %v584_v42, %v525_v27  ;;  %v528_v38 = vadd.f32 %v520_v37, %v461_v56  ;;  %v1234_v37 = vld [vmem:[%s1826_s3 + $0x8] sm:$0xf]  ;;  %v753_v56 = vld [vmem:[%s1827_s4] sm:$0xff] }
 0x1a8   :  { %v582_v34 = vrot.slane %v578_v43, 4 }
 0x1a9   :  { %v610_v47 = vadd.f32 %v607_v30, %v593_v31  ;;  %v609_v33 = vadd.f32 %v607_v30, %v592_v48 }
 0x1aa   :  { %v586_v12 = vsel %vm583_vm13, %v582_v34, %v578_v43 }
 0x1ab   :  { %v594_v52 = vadd.f32 %v586_v12, %v527_v25  ;;  %v580_v55 = vpop.permute.xlu1 %579  ;;  %623 = vrot.lane.b32.xlu0 %v610_v47, %s1301_s16  ;;  %v617_v41 = vcombine.high %v609_v33, %v609_v33 }
 0x1ac   :  { %v587_v58 = vsel %vm583_vm13, %v582_v34, %v580_v55 }
 0x1ad   :  { %v611_v57 = vadd.f32 %v607_v30, %v594_v52  ;;  %v595_v39 = vadd.f32 %v587_v58, %v528_v38  ;;  %v754_v58 = vld [vmem:[%s1828_s5] sm:$0xff] }
 0x1af   :  { %625 = vrot.lane.b32.xlu1 %v611_v57, %s1301_s16  ;;  %619 = vrot.lane.b32.xlu0 %v609_v33, %s1301_s16  ;;  %v618_v59 = vcombine.high %v611_v57, %v611_v57  ;;  %v612_v60 = vadd.f32 %v607_v30, %v595_v39 }
 0x1b3   :  { %627 = vrot.lane.b32.xlu0 %v618_v59, %s1301_s16  ;;  %621 = vrot.lane.b32.xlu1 %v617_v41, %s1301_s16 }
 0x1b7   :  { %629 = vrot.lane.b32.xlu1 %v612_v60, %s1301_s16 }
 0x21d   :  { %v624_v40 = vpop.permute.xlu0 %623 }
 0x221   :  { %v626_v61 = vpop.permute.xlu1 %625  ;;  %v620_v62 = vpop.permute.xlu0 %619 }
 0x225   :  { %v628_v63 = vpop.permute.xlu0 %627  ;;  %v622_v0 = vpop.permute.xlu1 %621 }
 0x226   :  { %v631_v1 = vsel %vm561_vm6, %v620_v62, %v622_v0  ;;  %v632_v4 = vsel %vm561_vm6, %v622_v0, %v624_v40  ;;  %v633_v35 = vsel %vm561_vm6, %v626_v61, %v628_v63  ;;  %v1233_v62 = vld [vmem:[%s1826_s3 + $0x4] sm:$0xf] }
 0x227   :  { %v639_v5 = vsel %vm130_vm7, %v631_v1, 0.0  ;;  %v640_v7 = vsel %vm130_vm7, %v632_v4, 0.0  ;;  %v644_v44 = vsel %vm130_vm7, %v633_v35, 0.0  ;;  %v1311_v1 = vmov 2  }
 0x228   :  { %v641_v8 = vadd.f32 %v640_v7, %v639_v5 }
 0x229   :  { %v630_v9 = vpop.permute.xlu1 %629 }
 0x22a   :  { %v634_v10 = vsel %vm561_vm6, %v628_v63, %v630_v9  ;;  %642 = vadd.xlane.f32.xlu0 %v641_v8 }
 0x22b   :  { %v645_v49 = vsel %vm130_vm7, %v634_v10, 0.0 }
 0x22c   :  { %v646_v13 = vadd.f32 %v645_v49, %v644_v44  ;;  %v768_v49 = vsub.s32 4, %v1390_v14 }
 0x22e   :  { %647 = vadd.xlane.f32.xlu1 %v646_v13 }
 0x2b7   :  { %v643_v17 = vpop.xlane.xlu0 %642 }
 0x2b8   :  { %v649_v19 = vsel %vm130_vm7, %v643_v17, 0.0 }
 0x2bb   :  { %v648_v18 = vpop.xlane.xlu1 %647 }
 0x2bc   :  { %v650_v20 = vsel %vm130_vm7, %v648_v18, 0.0 }
 0x2bd   :  { %v651_v21 = vadd.f32 %v650_v20, %v649_v19 }
 0x2bf   :  { %v652_v22 = vmul.f32 0.001953125, %v651_v21 }
 0x2c1   :  { %v660_v36 = vrot.slane %v652_v22, %v1561_v6 }
 0x2c3   :  { %v1609_v23 = vsub.f32 %v611_v57, %v660_v36  ;;  %v1611_v24 = vsub.f32 %v609_v33, %v660_v36  ;;  %v1617_v53 = vsub.f32 %v610_v47, %v660_v36  ;;  %v665_v11 = vsub.f32 %v612_v60, %v660_v36 }
 0x2c4   :  { %v1309_v57 = vmov 1   ;;  %v1310_v33 = vmov 3   ;;  %v1665_v36 = vsub.s32 2, %v1390_v14 }
 0x2c5   :  { %v668_v3 = vmul.f32 %v1609_v23, %v1609_v23  ;;  %v666_v26 = vmul.f32 %v1611_v24, %v1611_v24  ;;  %v667_v27 = vmul.f32 %v1617_v53, %v1617_v53  ;;  %v669_v29 = vmul.f32 %v665_v11, %v665_v11 }
 0x2c7   :  { %682 = vrot.lane.b32.xlu1 %v668_v3, %s1301_s16  ;;  %676 = vrot.lane.b32.xlu0 %v666_v26, %s1301_s16  ;;  %v674_v28 = vcombine.high %v666_v26, %v666_v26  ;;  %v675_v46 = vcombine.high %v668_v3, %v668_v3 }
 0x2cb   :  { %680 = vrot.lane.b32.xlu0 %v667_v27, %s1301_s16  ;;  %678 = vrot.lane.b32.xlu1 %v674_v28, %s1301_s16 }
 0x2cf   :  { %684 = vrot.lane.b32.xlu0 %v675_v46, %s1301_s16  ;;  %686 = vrot.lane.b32.xlu1 %v669_v29, %s1301_s16 }
 0x339   :  { %v683_v30 = vpop.permute.xlu1 %682  ;;  %v677_v31 = vpop.permute.xlu0 %676 }
 0x33d   :  { %v681_v32 = vpop.permute.xlu0 %680  ;;  %v679_v43 = vpop.permute.xlu1 %678 }
 0x33e   :  { %v688_v54 = vsel %vm561_vm6, %v677_v31, %v679_v43  ;;  %v689_v42 = vsel %vm561_vm6, %v679_v43, %v681_v32 }
 0x33f   :  { %v696_v34 = vsel %vm130_vm7, %v688_v54, 0.0  ;;  %v697_v45 = vsel %vm130_vm7, %v689_v42, 0.0 }
 0x340   :  { %v698_v25 = vadd.f32 %v697_v45, %v696_v34 }
 0x341   :  { %v685_v47 = vpop.permute.xlu0 %684  ;;  %v687_v48 = vpop.permute.xlu1 %686 }
 0x342   :  { %v690_v50 = vsel %vm561_vm6, %v683_v30, %v685_v47  ;;  %v691_v12 = vsel %vm561_vm6, %v685_v47, %v687_v48  ;;  %699 = vadd.xlane.f32.xlu0 %v698_v25 }
 0x343   :  { %v701_v51 = vsel %vm130_vm7, %v690_v50, 0.0  ;;  %v702_v52 = vsel %vm130_vm7, %v691_v12, 0.0 }
 0x344   :  { %v703_v55 = vadd.f32 %v702_v52, %v701_v51  ;;  %v1688_v51 = vsub.s32 3, %v1390_v14 }
 0x346   :  { %704 = vadd.xlane.f32.xlu1 %v703_v55 }
 0x357   :  { %735 = vperm.xlu1 %1259, %v1234_v37  }
 0x35b   :  { %1260 = vset.pattern.permute.xlu1 %v1309_v57 }
 0x35c   :  { %796 = vperm.xlu1 %1260, %v753_v56  }
 0x360   :  { %1262 = vset.pattern.permute.xlu1 %v1310_v33 }
 0x361   :  { %870 = vperm.xlu1 %1262, %v753_v56  }
 0x365   :  { %1263 = vset.pattern.permute.xlu1 %v1293_v2 }
 0x366   :  { %908 = vperm.xlu1 %1263, %v754_v58  }
 0x3cf   :  { %v700_v38 = vpop.xlane.xlu0 %699 }
 0x3d0   :  { %v706_v59 = vsel %vm130_vm7, %v700_v38, 0.0 }
 0x3d3   :  { %v705_v39 = vpop.xlane.xlu1 %704 }
 0x3d4   :  { %v707_v41 = vsel %vm130_vm7, %v705_v39, 0.0 }
 0x3d5   :  { %v708_v60 = vadd.f32 %v707_v41, %v706_v59 }
 0x3d7   :  { %v709_v40 = vmul.f32 0.001953125, %v708_v60  ;;  %v736_v4 = vpop.permute.xlu1 %735 }
 0x3d8   :  { %v743_v35 = vrot.slane %v736_v4, %v1561_v6 }
 0x3d9   :  { %v712_v61 = vadd.f32 1e-05, %v709_v40 }
 0x3db   :  { %1265 = vrsqrt.f32 %v712_v61  ;;  %v797_v54 = vpop.permute.xlu1 %796 }
 0x3e5   :  { %v1266_v63 = vpop.eup %1265 }
 0x3e6   :  { %v714_v0 = vmul.f32 %v1266_v63, %v1233_v62 }
 0x3e8   :  { %717 = vperm.xlu0 %1258, %v714_v0   ;;  %v1704_v0 = vpop.permute.xlu1 %870 }
 0x3ec   :  { %757 = vperm.xlu0 %1258, %v753_v56  }
 0x3f0   :  { %1261 = vset.pattern.permute.xlu0 %v1311_v1 }
 0x3f1   :  { %833 = vperm.xlu0 %1261, %v753_v56  }
 0x3f5   :  { %1264 = vset.pattern.permute.xlu0 %v1293_v2  ;;  %v805_v2 = vsub.s32 5, %v1390_v14 }
 0x467   :  { %v718_v5 = vpop.permute.xlu0 %717 }
 0x468   :  { %v725_v7 = vrot.slane %v718_v5, %v1561_v6 }
 0x46a   :  { %v727_v8 = vmul.f32 %v725_v7, %v1611_v24  ;;  %v728_v9 = vmul.f32 %v725_v7, %v1617_v53  ;;  %v729_v10 = vmul.f32 %v725_v7, %v1609_v23  ;;  %v730_v44 = vmul.f32 %v725_v7, %v665_v11 }
 0x46b   :  { %v842_v23 = vsub.s32 6, %v1390_v14  ;;  %v879_v24 = vsub.s32 7, %v1390_v14  ;;  %v758_v42 = vpop.permute.xlu0 %757 }
 0x46c   :  { %v745_v13 = vadd.f32 %v743_v35, %v727_v8  ;;  %v746_v17 = vadd.f32 %v743_v35, %v728_v9  ;;  %v747_v18 = vadd.f32 %v743_v35, %v729_v10  ;;  %v748_v19 = vadd.f32 %v743_v35, %v730_v44 }
 0x46e   :  { %v749_v20 = vmax.f32 %v745_v13, 0.0  ;;  %v1658_v21 = vmax.f32 %v746_v17, 0.0  ;;  %v1660_v22 = vmax.f32 %v747_v18, 0.0  ;;  %v1662_v6 = vmax.f32 %v748_v19, 0.0 }
 0x470   :  { %v765_v3 = vrot.slane %v749_v20, %v1393_v15  ;;  %v769_v26 = vrot.slane %v749_v20, %v768_v49  ;;  %v773_v53 = vrot.slane %v1658_v21, %v1393_v15  ;;  %v919_v27 = vrot.slane %v1660_v22, %v1393_v15  ;;  %v834_v63 = vpop.permute.xlu0 %833 }
 0x471   :  { %v923_v28 = vrot.slane %v1660_v22, %v768_v49  ;;  %v927_v11 = vrot.slane %v1662_v6, %v1393_v15  ;;  %v802_v46 = vrot.slane %v749_v20, %v1396_v16  ;;  %v806_v29 = vrot.slane %v749_v20, %v805_v2 }
 0x472   :  { %v780_v30 = vrot.slane %v765_v3, %v1393_v15  ;;  %v784_v31 = vrot.slane %v769_v26, %v1393_v15  ;;  %v788_v32 = vrot.slane %v773_v53, %v1393_v15  ;;  %v934_v43 = vrot.slane %v919_v27, %v1393_v15  ;;  %v909_v27 = vpop.permute.xlu1 %908 }
 0x473   :  { %v938_v34 = vrot.slane %v923_v28, %v1393_v15  ;;  %v942_v45 = vrot.slane %v927_v11, %v1393_v15  ;;  %v810_v25 = vrot.slane %v1658_v21, %v1396_v16  ;;  %v817_v47 = vrot.slane %v802_v46, %v1396_v16 }
 0x474   :  { %v789_v48 = vmul.f32 %v780_v30, %v758_v42  ;;  %v790_v50 = vmul.f32 %v784_v31, %v758_v42  ;;  %v791_v12 = vmul.f32 %v788_v32, %v758_v42  ;;  %v943_v52 = vmul.f32 %v934_v43, %v758_v42 }
 0x475   :  { %v944_v55 = vmul.f32 %v938_v34, %v758_v42  ;;  %v821_v37 = vrot.slane %v806_v29, %v1396_v16  ;;  %v825_v56 = vrot.slane %v810_v25, %v1396_v16  ;;  %v952_v15 = vrot.slane %v1660_v22, %v1396_v16 }
 0x476   :  { %v956_v57 = vrot.slane %v1660_v22, %v805_v2  ;;  %v960_v33 = vrot.slane %v1662_v6, %v1396_v16  ;;  %v826_v58 = vmul.f32 %v817_v47, %v797_v54  ;;  %v945_v38 = vmul.f32 %v942_v45, %v758_v42 }
 0x477   :  { %v827_v39 = vmul.f32 %v821_v37, %v797_v54  ;;  %v843_v59 = vrot.slane %v749_v20, %v842_v23  ;;  %v880_v41 = vrot.slane %v749_v20, %v879_v24  ;;  %v967_v60 = vrot.slane %v952_v15, %v1396_v16 }
 0x478   :  { %v971_v40 = vrot.slane %v956_v57, %v1396_v16  ;;  %v975_v61 = vrot.slane %v960_v33, %v1396_v16  ;;  %v828_v62 = vmul.f32 %v825_v56, %v797_v54  ;;  %v839_v7 = vrot.slane %v749_v20, %v1665_v36 }
 0x479   :  { %v830_v1 = vadd.f32 %v827_v39, %v790_v50  ;;  %v858_v4 = vrot.slane %v843_v59, %v1665_v36  ;;  %v895_v5 = vrot.slane %v880_v41, %v1688_v51  ;;  %v976_v35 = vmul.f32 %v967_v60, %v797_v54 }
 0x47a   :  { %v977_v8 = vmul.f32 %v971_v40, %v797_v54  ;;  %v829_v9 = vadd.f32 %v826_v58, %v789_v48  ;;  %v876_v10 = vrot.slane %v749_v20, %v1688_v51  ;;  %v978_v44 = vmul.f32 %v975_v61, %v797_v54 }
 0x47b   :  { %v864_v49 = vmul.f32 %v858_v4, %v834_v63  ;;  %v901_v16 = vmul.f32 %v895_v5, %v1704_v0  ;;  %v854_v13 = vrot.slane %v839_v7, %v1665_v36  ;;  %v831_v18 = vadd.f32 %v828_v62, %v791_v12 }
 0x47c   :  { %v891_v17 = vrot.slane %v876_v10, %v1688_v51  ;;  %v847_v19 = vrot.slane %v1658_v21, %v1665_v36  ;;  %v884_v2 = vrot.slane %v1658_v21, %v1688_v51  ;;  %v985_v20 = vrot.slane %v1660_v22, %v1665_v36 }
 0x47d   :  { %v867_v3 = vadd.f32 %v864_v49, %v830_v1  ;;  %v863_v26 = vmul.f32 %v854_v13, %v834_v63  ;;  %v1018_v53 = vrot.slane %v1660_v22, %v1688_v51  ;;  %v979_v29 = vadd.f32 %v976_v35, %v943_v52 }
 0x47e   :  { %v900_v28 = vmul.f32 %v891_v17, %v1704_v0  ;;  %v862_v11 = vrot.slane %v847_v19, %v1665_v36  ;;  %v899_v46 = vrot.slane %v884_v2, %v1688_v51  ;;  %v1000_v21 = vrot.slane %v985_v20, %v1665_v36 }
 0x47f   :  { %v904_v30 = vadd.f32 %v901_v16, %v867_v3  ;;  %v866_v31 = vadd.f32 %v863_v26, %v829_v9  ;;  %v1033_v32 = vrot.slane %v1018_v53, %v1688_v51  ;;  %v980_v54 = vadd.f32 %v977_v8, %v944_v55 }
 0x480   :  { %v865_v43 = vmul.f32 %v862_v11, %v834_v63  ;;  %v989_v42 = vrot.slane %v1660_v22, %v842_v23  ;;  %v1022_v34 = vrot.slane %v1660_v22, %v879_v24  ;;  %v902_v47 = vmul.f32 %v899_v46, %v1704_v0 }
 0x481   :  { %v1732_v45 = vadd.f32 %v909_v27, %v904_v30  ;;  %v903_v25 = vadd.f32 %v900_v28, %v866_v31  ;;  %v1009_v48 = vmul.f32 %v1000_v21, %v834_v63  ;;  %v1042_v12 = vmul.f32 %v1033_v32, %v1704_v0 }
 0x482   :  { %v868_v50 = vadd.f32 %v865_v43, %v831_v18  ;;  %v1004_v52 = vrot.slane %v989_v42, %v1665_v36  ;;  %v1037_v55 = vrot.slane %v1022_v34, %v1688_v51  ;;  %v993_v22 = vrot.slane %v1662_v6, %v1665_v36 }
 0x483   :  { %1056 = vrot.lane.b32.xlu1 %v1732_v45, %s1301_s16  ;;  %v1740_v23 = vadd.f32 %v909_v27, %v903_v25  ;;  %v1012_v14 = vadd.f32 %v1009_v48, %v979_v29  ;;  %v1026_v24 = vrot.slane %v1662_v6, %v1688_v51  ;;  %v981_v57 = vadd.f32 %v978_v44, %v945_v38 }
 0x484   :  { %v905_v37 = vadd.f32 %v902_v47, %v868_v50  ;;  %v1010_v56 = vmul.f32 %v1004_v52, %v834_v63  ;;  %v1008_v33 = vrot.slane %v993_v22, %v1665_v36  ;;  %v1043_v59 = vmul.f32 %v1037_v55, %v1704_v0 }
 0x485   :  { %1054 = vrot.lane.b32.xlu0 %v1740_v23, %s1301_s16  ;;  %v1045_v15 = vadd.f32 %v1042_v12, %v1012_v14  ;;  %v1041_v58 = vrot.slane %v1026_v24, %v1688_v51 }
 0x486   :  { %v1013_v39 = vadd.f32 %v1010_v56, %v980_v54  ;;  %v1751_v41 = vadd.f32 %v909_v27, %v905_v37  ;;  %v1011_v40 = vmul.f32 %v1008_v33, %v834_v63  ;;  %v1235_v37 = vld [vmem:[%s1828_s5 + $0x8] sm:$0xff] }
 0x487   :  { %v1753_v60 = vadd.f32 %v1045_v15, %v909_v27  ;;  %v1044_v36 = vmul.f32 %v1041_v58, %v1704_v0 }
 0x488   :  { %v1046_v6 = vadd.f32 %v1043_v59, %v1013_v39  ;;  %v1014_v38 = vadd.f32 %v1011_v40, %v981_v57  ;;  %v1236_v57 = vld [vmem:[%s1828_s5 + $0x10] sm:$0xff]  ;;  %s1312_s5 = smov [#allocation3]  }
 0x489   :  { %1058 = vrot.lane.b32.xlu0 %v1751_v41, %s1301_s16  ;;  %1071 = vrot.lane.b32.xlu1 %v1753_v60, %s1301_s16  ;;  %s1206_s9 = sshll.u32 %s1312_s5, 4  ;;  %s1207_s9 = int_to_ptr.vmem [resolvable:$true] %s1206_s9 }
 0x48a   :  { %v1760_v61 = vadd.f32 %v1046_v6, %v909_v27  ;;  %v1047_v51 = vadd.f32 %v1044_v36, %v1014_v38  ;;  %s1269_s10 = scalar_lea.vmem %s1207_s9, 512  ;;  %p1274_p1 = scmp.lt.s32.totalorder %s1207_s9, %s1207_s9 }
 0x48b   :  { %p1270_p0 = scmp.ne.s32.totalorder %s1207_s9, %s1269_s10  ;;  %p1275_p2 = scmp.lt.s32.totalorder %s1269_s10, %s1269_s10 }
 0x48c   :  { %v1764_v62 = vadd.f32 %v1047_v51, %v909_v27 }
 0x48d   :  { %1073 = vrot.lane.b32.xlu0 %v1760_v61, %s1301_s16  ;;  %p1276_p3 = por %p1275_p2, %p1274_p1 }
 0x48e   :  { %1075 = vrot.lane.b32.xlu1 %v1764_v62, %s1301_s16 }
 0x48f   :  { %p1277_p4 = pnand %p1276_p3, %p1270_p0 }
 0x4f5   :  { %v1057_v63 = vpop.permute.xlu1 %1056 }
 0x4f7   :  { %v1055_v1 = vpop.permute.xlu0 %1054 }
 0x4f8   :  { %v1060_v7 = vsel %vm561_vm6, %v1055_v1, %v1057_v63 }
 0x4fb   :  { %v1059_v4 = vpop.permute.xlu0 %1058  ;;  %v1072_v5 = vpop.permute.xlu1 %1071 }
 0x4fc   :  { %v1061_v35 = vsel %vm561_vm6, %v1057_v63, %v1059_v4 }
 0x4fd   :  { %v1064_v0 = vadd.f32 %v1061_v35, %v1060_v7 }
 0x4ff   :  { %1065 = vadd.xlane.f32.xlu0 %v1064_v0  ;;  %v1074_v8 = vpop.permute.xlu0 %1073 }
 0x500   :  { %v1077_v9 = vsel %vm561_vm6, %v1072_v5, %v1074_v8  ;;  %v1076_v10 = vpop.permute.xlu1 %1075 }
 0x501   :  { %v1078_v44 = vsel %vm561_vm6, %v1074_v8, %v1076_v10 }
 0x502   :  { %v1081_v49 = vadd.f32 %v1078_v44, %v1077_v9 }
 0x504   :  { %1082 = vadd.xlane.f32.xlu1 %v1081_v49 }
 0x58c   :  { %v1066_v16 = vpop.xlane.xlu0 %1065 }
 0x591   :  { %v1083_v13 = vpop.xlane.xlu1 %1082 }
 0x592   :  { %v1084_v17 = vadd.f32 %v1083_v13, %v1066_v16 }
 0x594   :  { %v1085_v18 = vmul.f32 0.001953125, %v1084_v17 }
 0x596   :  { %v1087_v19 = vsub.f32 %v1732_v45, %v1085_v18  ;;  %v1086_v2 = vsub.f32 %v1740_v23, %v1085_v18  ;;  %v1109_v20 = vsub.f32 %v1753_v60, %v1085_v18  ;;  %v1088_v53 = vsub.f32 %v1751_v41, %v1085_v18 }
 0x597   :  { %v1111_v11 = vsub.f32 %v1764_v62, %v1085_v18  ;;  %v1110_v46 = vsub.f32 %v1760_v61, %v1085_v18 }
 0x598   :  { %v1090_v3 = vmul.f32 %v1087_v19, %v1087_v19  ;;  %v1089_v26 = vmul.f32 %v1086_v2, %v1086_v2  ;;  %v1112_v27 = vmul.f32 %v1109_v20, %v1109_v20  ;;  %v1091_v28 = vmul.f32 %v1088_v53, %v1088_v53 }
 0x599   :  { %v1114_v29 = vmul.f32 %v1111_v11, %v1111_v11  ;;  %v1113_v30 = vmul.f32 %v1110_v46, %v1110_v46 }
 0x59a   :  { %1097 = vrot.lane.b32.xlu1 %v1090_v3, %s1301_s16  ;;  %1095 = vrot.lane.b32.xlu0 %v1089_v26, %s1301_s16 }
 0x59e   :  { %1118 = vrot.lane.b32.xlu1 %v1112_v27, %s1301_s16  ;;  %1099 = vrot.lane.b32.xlu0 %v1091_v28, %s1301_s16 }
 0x5a2   :  { %1122 = vrot.lane.b32.xlu1 %v1114_v29, %s1301_s16  ;;  %1120 = vrot.lane.b32.xlu0 %v1113_v30, %s1301_s16 }
 0x60c   :  { %v1098_v31 = vpop.permute.xlu1 %1097  ;;  %v1096_v21 = vpop.permute.xlu0 %1095 }
 0x60d   :  { %v1101_v54 = vsel %vm561_vm6, %v1096_v21, %v1098_v31 }
 0x610   :  { %v1119_v32 = vpop.permute.xlu1 %1118  ;;  %v1100_v43 = vpop.permute.xlu0 %1099 }
 0x611   :  { %v1102_v42 = vsel %vm561_vm6, %v1098_v31, %v1100_v43 }
 0x612   :  { %v1105_v34 = vadd.f32 %v1102_v42, %v1101_v54 }
 0x614   :  { %v1123_v25 = vpop.permute.xlu1 %1122  ;;  %1106 = vadd.xlane.f32.xlu0 %v1105_v34  ;;  %v1121_v47 = vpop.permute.xlu0 %1120 }
 0x615   :  { %v1124_v48 = vsel %vm561_vm6, %v1119_v32, %v1121_v47  ;;  %v1125_v50 = vsel %vm561_vm6, %v1121_v47, %v1123_v25 }
 0x616   :  { %v1128_v12 = vadd.f32 %v1125_v50, %v1124_v48 }
 0x618   :  { %1129 = vadd.xlane.f32.xlu1 %v1128_v12 }
 0x6a1   :  { %v1107_v52 = vpop.xlane.xlu0 %1106 }
 0x6a5   :  { %v1130_v55 = vpop.xlane.xlu1 %1129 }
 0x6a6   :  { %v1131_v14 = vadd.f32 %v1130_v55, %v1107_v52 }
 0x6a8   :  { %v1132_v22 = vmul.f32 0.001953125, %v1131_v14 }
 0x6aa   :  { %v1135_v24 = vadd.f32 1e-05, %v1132_v22 }
 0x6ac   :  { %1267 = vrsqrt.f32 %v1135_v24 }
 0x6b6   :  { %v1268_v56 = vpop.eup %1267 }
 0x6b7   :  { %v1137_v15 = vmul.f32 %v1268_v56, %v1235_v37 }
 0x6b9   :  { %1144 = vperm.xlu0 %1264, %v1137_v15   ;;  %v1140_v33 = vmul.f32 %v1137_v15, %v1085_v18 }
 0x6bb   :  { %v1141_v58 = vsub.f32 %v1236_v57, %v1140_v33 }
 0x6bd   :  { %1152 = vperm.xlu1 %1263, %v1141_v58  }
 0x738   :  { %v1145_v39 = vpop.permute.xlu0 %1144 }
 0x739   :  { %v1147_v59 = vmul.f32 %v1145_v39, %v1740_v23  ;;  %v1148_v38 = vmul.f32 %v1145_v39, %v1732_v45  ;;  %v1149_v63 = vmul.f32 %v1145_v39, %v1751_v41  ;;  %v1176_v5 = vmul.f32 %v1145_v39, %v1753_v60 }
 0x73a   :  { %v1177_v23 = vmul.f32 %v1145_v39, %v1760_v61  ;;  %v1178_v8 = vmul.f32 %v1145_v39, %v1764_v62 }
 0x73c   :  { %v1153_v40 = vpop.permute.xlu1 %1152 }
 0x73d   :  { %v1155_v6 = vadd.f32 %v1153_v40, %v1147_v59  ;;  %v1156_v51 = vadd.f32 %v1153_v40, %v1148_v38  ;;  %v1157_v4 = vadd.f32 %v1153_v40, %v1149_v63  ;;  %v1179_v35 = vadd.f32 %v1176_v5, %v1153_v40 }
 0x73e   :  { %v1180_v45 = vadd.f32 %v1177_v23, %v1153_v40  ;;  %v1181_v41 = vadd.f32 %v1178_v8, %v1153_v40 }
 0x73f   :  { %v1158_v36 = vmax.f32 %v1155_v6, 0.0  ;;  %v1159_v1 = vmax.f32 %v1156_v51, 0.0  ;;  %v1160_v7 = vmax.f32 %v1157_v4, 0.0  ;;  %v1182_v0 = vmax.f32 %v1179_v35, 0.0 }
 0x740   :  { %v1183_v9 = vmax.f32 %v1180_v45, 0.0  ;;  %v1184_v10 = vmax.f32 %v1181_v41, 0.0 }
 0x741   :  { %1164 = vrot.lane.b32.xlu1 %v1158_v36, %s1301_s16 }
 0x745   :  { %1166 = vrot.lane.b32.xlu1 %v1159_v1, %s1301_s16 }
 0x749   :  { %1168 = vrot.lane.b32.xlu1 %v1160_v7, %s1301_s16 }
 0x74d   :  { %1188 = vrot.lane.b32.xlu1 %v1182_v0, %s1301_s16 }
 0x751   :  { %1190 = vrot.lane.b32.xlu1 %v1183_v9, %s1301_s16 }
 0x755   :  { %1192 = vrot.lane.b32.xlu1 %v1184_v10, %s1301_s16 }
 0x7b3   :  { %v1165_v60 = vpop.permute.xlu1 %1164 }
 0x7b7   :  { %v1167_v44 = vpop.permute.xlu1 %1166 }
 0x7b8   :  { %v1170_v49 = vsel %vm561_vm6, %v1165_v60, %v1167_v44 }
 0x7b9   :  { %1174 = vst [vmem:[#allocation3] sm:$0xff] %v1170_v49 }
 0x7bb   :  { %v1169_v61 = vpop.permute.xlu1 %1168 }
 0x7bc   :  { %v1171_v16 = vsel %vm561_vm6, %v1167_v44, %v1169_v61 }
 0x7bd   :  { %1175 = vst [vmem:[#allocation3 + $0x8] sm:$0xff] %v1171_v16 }
 0x7bf   :  { %v1189_v13 = vpop.permute.xlu1 %1188 }
 0x7c3   :  { %v1191_v62 = vpop.permute.xlu1 %1190 }
 0x7c4   :  { %v1194_v17 = vsel %vm561_vm6, %v1189_v13, %v1191_v62 }
 0x7c5   :  { %1199 = vst [vmem:[#allocation3 + $0x10] sm:$0xff] %v1194_v17 }
 0x7c7   :  { %v1193_v18 = vpop.permute.xlu1 %1192 }
 0x7c8   :  { %v1195_v19 = vsel %vm561_vm6, %v1191_v62, %v1193_v18 }
 0x7c9   :  { %1200 = vst [vmem:[#allocation3 + $0x18] sm:$0xff] %v1195_v19 }
 0x7ca   :  { %1280 = shalt.err (!%p1277_p4)
}
 0x7cb   :  { %s1281_s13 = scalar_lea.hbm %s1829_s6, 512 }
 0x7cc   :  { %p1282_p5 = scmp.ne.s32.totalorder %s1829_s6, %s1281_s13  ;;  %p1285_p6 = scmp.lt.u32.totalorder %s1281_s13, %s1829_s6 }
 0x7ce   :  { %p1287_p7 = pnand %p1285_p6, %p1282_p5 }
 0x7d0   :  { %1290 = shalt.err (!%p1287_p7)
}
 0x7d1   :  { %s1313_s18 = smov 256  }
 0x7d2   :  { %1212 = dma.vmem_to_hbm [thread:$0]  %s1207_s9, 512, %s1829_s6, [#allocation4], %s1313_s18, %s1313_s18, %s1300_s2  }
 0x7d3   :  { %1291 = dma.done.wait [#allocation4], 512  }
 0x7d4   :  { %1292 = vsyncadd [#allocation4], 4294966784 }
 0x7d5   :  { %1216 = vsyncpa [#allocation4], 1 }

</bundles_post_ra>
